<compile_context>
chip_gen: v5e
topology: v5e:2x2
jax: 0.10.0
libtpu: 0.0.40
codegen_flags: <defaults>
</compile_context>

<pallas_src>
import functools
import math

import jax
import jax.numpy as jnp
from jax.experimental import pallas as pl
from jax.experimental.pallas import tpu as pltpu


def _round_up(a, b):
    return -(-a // b) * b


def _conv_bn_relu_kernel(x_ref, w_ref, scale_ref, shift_ref, o_ref, *,
                         kh, kw, stride, tile_oh, ow, has_relu):
    # x_ref:     (Hpp, Wp, Cin)        bf16 full padded image (batch dim squeezed)
    # w_ref:     (KH*KW*Cin, TCout)    bf16 raw conv weights (K order = kh, kw, cin)
    # scale_ref: (1, TCout)            f32 per-channel BN scale
    # shift_ref: (1, TCout)            f32 conv bias + BN shift
    # o_ref:     (tile_oh*OW, TCout)   lane-dense output tile
    t = pl.program_id(2)
    cin = x_ref.shape[-1]
    row0 = pl.multiple_of(t * (tile_oh * stride), tile_oh * stride)

    # Implicit im2col: gather the KH*KW taps into one lane-contiguous slab so the
    # whole tile is a single MXU dot with K = KH*KW*Cin instead of KH*KW dots with
    # K = Cin accumulated through a f32 VMEM scratch.
    pieces = []
    for di in range(kh):
        for dj in range(kw):
            if stride == 1:
                rows = pl.ds(row0 + di, tile_oh)
                cols = pl.ds(dj, ow)
            else:
                rows = pl.ds(row0 + di, tile_oh, stride)
                cols = pl.ds(dj, ow, stride)
            pieces.append(x_ref[rows, cols, :])            # (tile_oh, OW, Cin)
    patches = jnp.concatenate(pieces, axis=-1)             # (tile_oh, OW, KH*KW*Cin)
    # Merge leading dims only (lane dim untouched); free when OW matches the
    # sublane packing, otherwise a bounded relayout.
    lhs = patches.reshape(tile_oh * ow, kh * kw * cin)

    acc = jnp.dot(lhs, w_ref[...], preferred_element_type=jnp.float32)

    # BN scale applied in f32 here (not folded into bf16 weights) + shift + ReLU,
    # then a single store of the tile.
    y = acc * scale_ref[...] + shift_ref[...]
    if has_relu:
        y = jnp.maximum(y, 0.0)
    o_ref[...] = y.astype(o_ref.dtype)


@functools.partial(
    jax.jit,
    static_argnames=("stride", "padding", "has_bn", "has_relu",
                     "target_tile_m", "vmem_budget_bytes", "out_dtype"))
def conv_bn_relu(x_nchw, weight, bias, gamma, beta, run_mean, run_var,
                 stride=1, padding=1, eps=1e-5, has_bn=True, has_relu=True,
                 target_tile_m=1024, vmem_budget_bytes=40 * 1024 * 1024,
                 out_dtype=jnp.float32):
    """Conv2d(groups=1) + BatchNorm2d(eval) + ReLU.

    x_nchw : (N, Cin, H, W)     weight : (Cout, Cin, KH, KW)
    returns: (N, Cout, OH, OW)  in out_dtype (default float32).
    """
    n, cin, h, w = x_nchw.shape
    cout, cin_w, kh, kw = weight.shape
    assert cin_w == cin, "groups != 1 is unsupported"   # TODO(synk): grouped conv

    oh = (h + 2 * padding - kh) // stride + 1
    ow = (w + 2 * padding - kw) // stride + 1
    k_dim = kh * kw * cin

    # --- BN (eval mode) fold: per-channel f32 scale + shift applied in-kernel. ---
    if has_bn:
        inv_std = jax.lax.rsqrt(run_var.astype(jnp.float32) + eps)
        scale = gamma.astype(jnp.float32) * inv_std                       # (Cout,)
        shift = beta.astype(jnp.float32) + (
            bias.astype(jnp.float32) - run_mean.astype(jnp.float32)) * scale
    else:
        scale = jnp.ones((cout,), jnp.float32)
        shift = bias.astype(jnp.float32)

    # --- Weights: (Cout,Cin,KH,KW) -> (KH*KW*Cin, Coutp) bf16, K order (kh,kw,cin). ---
    coutp = _round_up(cout, 128)
    tcout = 256 if (coutp % 256 == 0) else 128
    n_co = coutp // tcout
    w2 = jnp.transpose(weight.astype(jnp.float32), (2, 3, 1, 0)).reshape(k_dim, cout)
    w2 = jnp.pad(w2, ((0, 0), (0, coutp - cout))).astype(jnp.bfloat16)
    scale_p = jnp.pad(scale, (0, coutp - cout)).reshape(1, coutp)
    shift_p = jnp.pad(shift, (0, coutp - cout)).reshape(1, coutp)

    # --- Row tiling: VMEM-budget-aware, no OH-divisibility requirement. ---
    lane = 128
    hp, wp = h + 2 * padding, w + 2 * padding
    # VMEM-tiled footprints (bf16 tiles (16,128), f32 tiles (8,128)); x/w/out are
    # double-buffered by the pipeline.
    x_block_bytes = hp * _round_up(wp, 16) * _round_up(cin, lane) * 2
    w_block_bytes = _round_up(k_dim, 16) * tcout * 2
    fixed_bytes = 2 * x_block_bytes + 2 * w_block_bytes + 4 * tcout * 4 + (2 << 20)
    per_row_bytes = (ow * tcout * 4 * 3                          # out (2 bufs) + f32 acc
                     + ow * _round_up(k_dim, lane) * 2 * 3)      # im2col slab + slack
    rows_budget = max(int((vmem_budget_bytes - fixed_bytes) // max(per_row_bytes, 1)), 1)
    align = 8 // math.gcd(ow, 8)          # keep tile_m % 8 == 0 when OH is split
    tile_oh = min(oh, max(1, target_tile_m // ow), rows_budget)
    if tile_oh < oh:
        tile_oh = max(align, (tile_oh // align) * align)
    tile_oh = min(tile_oh, oh)
    n_t = -(-oh // tile_oh)               # ragged last tile: OH padded, sliced later
    oh_pad = n_t * tile_oh
    tile_m = tile_oh * ow

    est_bytes = fixed_bytes + tile_oh * per_row_bytes
    vmem_limit = int(min(max(est_bytes + (8 << 20), 32 << 20), 64 << 20))

    # --- Input: NCHW -> NHWC, spatial pad (+ extra bottom rows so the ragged last
    #     row tile reads stay in-bounds), bf16.  No im2col and no M padding in HBM. ---
    hp2 = max(hp, (oh_pad - 1) * stride + kh)
    x_nhwc = jnp.transpose(x_nchw, (0, 2, 3, 1))
    x_pad = jnp.pad(x_nhwc, ((0, 0), (padding, padding + (hp2 - hp)),
                             (padding, padding), (0, 0))).astype(jnp.bfloat16)

    kernel = functools.partial(
        _conv_bn_relu_kernel, kh=kh, kw=kw, stride=stride,
        tile_oh=tile_oh, ow=ow, has_relu=has_relu)

    out = pl.pallas_call(
        kernel,
        out_shape=jax.ShapeDtypeStruct((n, oh_pad * ow, coutp), out_dtype),
        grid_spec=pltpu.PrefetchScalarGridSpec(
            num_scalar_prefetch=0,
            grid=(n, n_co, n_t),
            in_specs=[
                # Full padded image per batch element, resident across co/t steps.
                pl.BlockSpec((None, hp2, wp, cin), lambda b, co, t: (b, 0, 0, 0)),
                # Raw conv weights reshaped to a (K, Cout) GEMM operand, Cout-tiled.
                pl.BlockSpec((k_dim, tcout), lambda b, co, t: (0, co)),
                # Per-channel f32 BN scale and shift.
                pl.BlockSpec((1, tcout), lambda b, co, t: (0, co)),
                pl.BlockSpec((1, tcout), lambda b, co, t: (0, co)),
            ],
            out_specs=pl.BlockSpec((None, tile_m, tcout), lambda b, co, t: (b, t, co)),
        ),
        compiler_params=pltpu.CompilerParams(
            # All axes independent (disjoint output blocks, no carried state) ->
            # both v7x TensorCores usable even at N=1.
            dimension_semantics=("parallel", "parallel", "parallel"),
            vmem_limit_bytes=vmem_limit,
        ),
    )(x_pad, w2, scale_p, shift_p)

    out = out[:, :oh * ow, :cout]              # drop OH/Cout padding
    out = out.reshape(n, oh, ow, cout)         # NHWC
    return jnp.transpose(out, (0, 3, 1, 2))    # module contract is NCHW


def _reference(x_nchw, weight, bias, gamma, beta, run_mean, run_var,
               stride, padding, eps=1e-5):
    y = jax.lax.conv_general_dilated(
        x_nchw.astype(jnp.float32), weight.astype(jnp.float32),
        window_strides=(stride, stride),
        padding=((padding, padding), (padding, padding)),
        dimension_numbers=("NCHW", "OIHW", "NCHW"))
    y = y + bias.reshape(1, -1, 1, 1)
    y = (y - run_mean.reshape(1, -1, 1, 1)) * jax.lax.rsqrt(
        run_var.reshape(1, -1, 1, 1) + eps)
    y = y * gamma.reshape(1, -1, 1, 1) + beta.reshape(1, -1, 1, 1)
    return jnp.maximum(y, 0.0)


if __name__ == "__main__":
    # conv_bn_relu(in_planes=4, out_planes=16, kernel_size=3, stride=1, padding=1)
    N, Cin, H, W = 2, 4, 16, 16
    Cout, KH, KW = 16, 3, 3
    stride, padding = 1, 1

    key = jax.random.PRNGKey(0)
    kx, kw_, kb, kg, kbeta = jax.random.split(key, 5)

    x = jax.random.normal(kx, (N, Cin, H, W), dtype=jnp.float32)
    weight = jax.random.normal(kw_, (Cout, Cin, KH, KW), dtype=jnp.float32) * 0.1
    bias = jax.random.normal(kb, (Cout,), dtype=jnp.float32) * 0.1
    # BatchNorm2d parameters (deterministic, eval-mode running stats).
    gamma = 1.0 + 0.1 * jax.random.normal(kg, (Cout,), dtype=jnp.float32)
    beta = 0.1 * jax.random.normal(kbeta, (Cout,), dtype=jnp.float32)
    run_mean = jnp.zeros((Cout,), dtype=jnp.float32)
    run_var = jnp.ones((Cout,), dtype=jnp.float32)

    out = conv_bn_relu(x, weight, bias, gamma, beta, run_mean, run_var,
                       stride=stride, padding=padding)
    out = jax.block_until_ready(out)

    ref = _reference(x, weight, bias, gamma, beta, run_mean, run_var,
                     stride, padding)
    assert out.shape == (N, Cout, H, W), out.shape
    max_err = float(jnp.max(jnp.abs(out - ref)))
    # bf16 MXU operands with f32 accumulation -> tolerance above f32-exact.
    assert jnp.allclose(out, ref, atol=3e-2, rtol=3e-2), max_err
    print("KERNEL_OK")
</pallas_src>

<mosaic_0001>
module attributes {stable_mosaic.version = 11 : i64} {
  func.func @_conv_bn_relu_kernel(%arg0: i32, %arg1: i32, %arg2: i32, %arg3: memref<1x18x18x4xbf16, #tpu.memory_space<vmem>>, %arg4: memref<36x128xbf16, #tpu.memory_space<vmem>>, %arg5: memref<1x128xf32, #tpu.memory_space<vmem>>, %arg6: memref<1x128xf32, #tpu.memory_space<vmem>>, %arg7: memref<1x256x128xf32, #tpu.memory_space<vmem>>) attributes {dimension_semantics = [#tpu.dimension_semantics<parallel>, #tpu.dimension_semantics<parallel>, #tpu.dimension_semantics<parallel>], iteration_bounds = array<i64: 2, 1, 1>, scalar_prefetch = 0 : i64, scratch_operands = 0 : i64, tpu.core_type = #tpu.core_type<tc>, window_params = [{transform_indices = @transform_0, window_bounds = array<i64: 1, 18, 18, 4>}, {transform_indices = @transform_1, window_bounds = array<i64: 36, 128>}, {transform_indices = @transform_2, window_bounds = array<i64: 1, 128>}, {transform_indices = @transform_3, window_bounds = array<i64: 1, 128>}, {transform_indices = @transform_4, window_bounds = array<i64: 1, 256, 128>}]} {
    %c16_i32 = arith.constant 16 : i32
    %0 = arith.muli %arg2, %c16_i32 : i32
    %1 = tpu.assume_multiple %0, 16 : i32
    %c0_i32 = arith.constant 0 : i32
    %2 = arith.addi %1, %c0_i32 : i32
    %c0 = arith.constant 0 : index
    %3 = arith.index_cast %2 : i32 to index
    %c0_0 = arith.constant 0 : index
    %c0_1 = arith.constant 0 : index
    %4 = vector.load %arg3[%c0, %3, %c0_0, %c0_1] : memref<1x18x18x4xbf16, #tpu.memory_space<vmem>>, vector<1x16x16x4xbf16>
    %5 = vector.shape_cast %4 : vector<1x16x16x4xbf16> to vector<16x16x4xbf16>
    %c0_i32_2 = arith.constant 0 : i32
    %6 = arith.addi %1, %c0_i32_2 : i32
    %c0_3 = arith.constant 0 : index
    %7 = arith.index_cast %6 : i32 to index
    %c1 = arith.constant 1 : index
    %c0_4 = arith.constant 0 : index
    %8 = vector.load %arg3[%c0_3, %7, %c1, %c0_4] : memref<1x18x18x4xbf16, #tpu.memory_space<vmem>>, vector<1x16x16x4xbf16>
    %9 = vector.shape_cast %8 : vector<1x16x16x4xbf16> to vector<16x16x4xbf16>
    %c0_i32_5 = arith.constant 0 : i32
    %10 = arith.addi %1, %c0_i32_5 : i32
    %c0_6 = arith.constant 0 : index
    %11 = arith.index_cast %10 : i32 to index
    %c2 = arith.constant 2 : index
    %c0_7 = arith.constant 0 : index
    %12 = vector.load %arg3[%c0_6, %11, %c2, %c0_7] : memref<1x18x18x4xbf16, #tpu.memory_space<vmem>>, vector<1x16x16x4xbf16>
    %13 = vector.shape_cast %12 : vector<1x16x16x4xbf16> to vector<16x16x4xbf16>
    %c1_i32 = arith.constant 1 : i32
    %14 = arith.addi %1, %c1_i32 : i32
    %c0_8 = arith.constant 0 : index
    %15 = arith.index_cast %14 : i32 to index
    %c0_9 = arith.constant 0 : index
    %c0_10 = arith.constant 0 : index
    %16 = vector.load %arg3[%c0_8, %15, %c0_9, %c0_10] : memref<1x18x18x4xbf16, #tpu.memory_space<vmem>>, vector<1x16x16x4xbf16>
    %17 = vector.shape_cast %16 : vector<1x16x16x4xbf16> to vector<16x16x4xbf16>
    %c1_i32_11 = arith.constant 1 : i32
    %18 = arith.addi %1, %c1_i32_11 : i32
    %c0_12 = arith.constant 0 : index
    %19 = arith.index_cast %18 : i32 to index
    %c1_13 = arith.constant 1 : index
    %c0_14 = arith.constant 0 : index
    %20 = vector.load %arg3[%c0_12, %19, %c1_13, %c0_14] : memref<1x18x18x4xbf16, #tpu.memory_space<vmem>>, vector<1x16x16x4xbf16>
    %21 = vector.shape_cast %20 : vector<1x16x16x4xbf16> to vector<16x16x4xbf16>
    %c1_i32_15 = arith.constant 1 : i32
    %22 = arith.addi %1, %c1_i32_15 : i32
    %c0_16 = arith.constant 0 : index
    %23 = arith.index_cast %22 : i32 to index
    %c2_17 = arith.constant 2 : index
    %c0_18 = arith.constant 0 : index
    %24 = vector.load %arg3[%c0_16, %23, %c2_17, %c0_18] : memref<1x18x18x4xbf16, #tpu.memory_space<vmem>>, vector<1x16x16x4xbf16>
    %25 = vector.shape_cast %24 : vector<1x16x16x4xbf16> to vector<16x16x4xbf16>
    %c2_i32 = arith.constant 2 : i32
    %26 = arith.addi %1, %c2_i32 : i32
    %c0_19 = arith.constant 0 : index
    %27 = arith.index_cast %26 : i32 to index
    %c0_20 = arith.constant 0 : index
    %c0_21 = arith.constant 0 : index
    %28 = vector.load %arg3[%c0_19, %27, %c0_20, %c0_21] : memref<1x18x18x4xbf16, #tpu.memory_space<vmem>>, vector<1x16x16x4xbf16>
    %29 = vector.shape_cast %28 : vector<1x16x16x4xbf16> to vector<16x16x4xbf16>
    %c2_i32_22 = arith.constant 2 : i32
    %30 = arith.addi %1, %c2_i32_22 : i32
    %c0_23 = arith.constant 0 : index
    %31 = arith.index_cast %30 : i32 to index
    %c1_24 = arith.constant 1 : index
    %c0_25 = arith.constant 0 : index
    %32 = vector.load %arg3[%c0_23, %31, %c1_24, %c0_25] : memref<1x18x18x4xbf16, #tpu.memory_space<vmem>>, vector<1x16x16x4xbf16>
    %33 = vector.shape_cast %32 : vector<1x16x16x4xbf16> to vector<16x16x4xbf16>
    %c2_i32_26 = arith.constant 2 : i32
    %34 = arith.addi %1, %c2_i32_26 : i32
    %c0_27 = arith.constant 0 : index
    %35 = arith.index_cast %34 : i32 to index
    %c2_28 = arith.constant 2 : index
    %c0_29 = arith.constant 0 : index
    %36 = vector.load %arg3[%c0_27, %35, %c2_28, %c0_29] : memref<1x18x18x4xbf16, #tpu.memory_space<vmem>>, vector<1x16x16x4xbf16>
    %37 = vector.shape_cast %36 : vector<1x16x16x4xbf16> to vector<16x16x4xbf16>
    %38 = tpu.concatenate %5, %9, %13, %17, %21, %25, %29, %33, %37 in 2 : vector<16x16x4xbf16>, vector<16x16x4xbf16>, vector<16x16x4xbf16>, vector<16x16x4xbf16>, vector<16x16x4xbf16>, vector<16x16x4xbf16>, vector<16x16x4xbf16>, vector<16x16x4xbf16>, vector<16x16x4xbf16> -> vector<16x16x36xbf16>
    %39 = vector.shape_cast %38 : vector<16x16x36xbf16> to vector<256x36xbf16>
    %c0_30 = arith.constant 0 : index
    %c0_31 = arith.constant 0 : index
    %40 = vector.load %arg4[%c0_30, %c0_31] : memref<36x128xbf16, #tpu.memory_space<vmem>>, vector<36x128xbf16>
    %cst = arith.constant dense<0.000000e+00> : vector<256x128xf32>
    %41 = tpu.matmul %39, %40, %cst {dimension_numbers = #tpu.dot_dimension_numbers<[1], [0], [0], [1], [0, 0, 1, 1], [], []>} : vector<256x36xbf16>, vector<36x128xbf16>, vector<256x128xf32> -> vector<256x128xf32>
    %c0_32 = arith.constant 0 : index
    %c0_33 = arith.constant 0 : index
    %42 = vector.load %arg5[%c0_32, %c0_33] : memref<1x128xf32, #tpu.memory_space<vmem>>, vector<1x128xf32>
    %43 = vector.broadcast %42 : vector<1x128xf32> to vector<256x128xf32>
    %44 = arith.mulf %41, %43 : vector<256x128xf32>
    %c0_34 = arith.constant 0 : index
    %c0_35 = arith.constant 0 : index
    %45 = vector.load %arg6[%c0_34, %c0_35] : memref<1x128xf32, #tpu.memory_space<vmem>>, vector<1x128xf32>
    %46 = vector.broadcast %45 : vector<1x128xf32> to vector<256x128xf32>
    %47 = arith.addf %44, %46 : vector<256x128xf32>
    %cst_36 = arith.constant 0.000000e+00 : f32
    %48 = vector.broadcast %cst_36 : f32 to vector<256x128xf32>
    %49 = arith.maximumf %47, %48 : vector<256x128xf32>
    %c0_37 = arith.constant 0 : index
    %c0_38 = arith.constant 0 : index
    %c0_39 = arith.constant 0 : index
    %50 = vector.load %arg7[%c0_37, %c0_38, %c0_39] : memref<1x256x128xf32, #tpu.memory_space<vmem>>, vector<1x256x128xf32>
    %51 = vector.shape_cast %50 : vector<1x256x128xf32> to vector<256x128xf32>
    %52 = vector.shape_cast %49 : vector<256x128xf32> to vector<1x256x128xf32>
    tpu.vector_store %arg7[%c0_37, %c0_38, %c0_39], %52 {strides = array<i32>} : memref<1x256x128xf32, #tpu.memory_space<vmem>>, vector<1x256x128xf32>,
    return
  }
  func.func @transform_0(%arg0: i32, %arg1: i32, %arg2: i32) -> (i32, i32, i32, i32) {
    %c0_i32 = arith.constant 0 : i32
    %c0_i32_0 = arith.constant 0 : i32
    %c0_i32_1 = arith.constant 0 : i32
    %c0_i32_2 = arith.constant 0 : i32
    return %arg0, %c0_i32, %c0_i32_0, %c0_i32_1 : i32, i32, i32, i32
  }
  func.func @transform_1(%arg0: i32, %arg1: i32, %arg2: i32) -> (i32, i32) {
    %c0_i32 = arith.constant 0 : i32
    %c0_i32_0 = arith.constant 0 : i32
    return %c0_i32, %arg1 : i32, i32
  }
  func.func @transform_2(%arg0: i32, %arg1: i32, %arg2: i32) -> (i32, i32) {
    %c0_i32 = arith.constant 0 : i32
    %c0_i32_0 = arith.constant 0 : i32
    return %c0_i32, %arg1 : i32, i32
  }
  func.func @transform_3(%arg0: i32, %arg1: i32, %arg2: i32) -> (i32, i32) {
    %c0_i32 = arith.constant 0 : i32
    %c0_i32_0 = arith.constant 0 : i32
    return %c0_i32, %arg1 : i32, i32
  }
  func.func @transform_4(%arg0: i32, %arg1: i32, %arg2: i32) -> (i32, i32, i32) {
    %c0_i32 = arith.constant 0 : i32
    return %arg0, %arg2, %arg1 : i32, i32, i32
  }
}

</mosaic_0001>

<bundles_post_ra>
// kernel: conv_bn_relu.1
= control target key start
LH: loop header
LB: loop body
LE: loop exit
PB: predicated region body
PF: predicated region fallthrough
CT: control target
= control target key end

     0   :  { %s3218_s15 = smov 0   ;;  %s3220_s16 = smov 0   ;;  %s4503_s0 = inlined_call_operand.vmem [shape: bf16[2,18,18,4], index: 0, kind: input, shape index: {}]   ;;  %s4504_s1 = inlined_call_operand.vmem [shape: bf16[36,128], index: 1, kind: input, shape index: {}]   ;;  %s4505_s2 = inlined_call_operand.vmem [shape: f32[1,128], index: 2, kind: input, shape index: {}]   ;;  %s4506_s3 = inlined_call_operand.vmem [shape: f32[1,128], index: 3, kind: input, shape index: {}]   ;;  %s4507_s4 = inlined_call_operand.vmem [shape: f32[2,256,128], index: 4, kind: output, shape index: {}]  }
   0x1   :  { %s3222_s17 = smov 0  }
   0x2 LB: > { %s33_s18 = sadd.s32 1, %s3179_s16  ;;  %p2688_p0 = scmp.ge.s32.totalorder %s3183_s17, 1  ;;  %s3183_s17 = sphi %s3222_s17, %s14_s17   ;;  %s3179_s16 = sphi %s3220_s16, %s4515_s16   ;;  %s3175_s15 = sphi %s3218_s15, %s4514_s15  }
   0x3   : > { %p35_p1 = scmp.ge.s32.totalorder %s33_s18, 2  ;;  %p210_p2 = scmp.lt.s32.totalorder %s3183_s17, 3 }
   0x5   : > { %s4517_s18 = smov (%p35_p1, %s33_s18), 0  ;;  %p211_p3 = pnand %p2688_p0, %p210_p2 }
   0x7   : > { %214 = sbr.rel (%p211_p3) target bundleno = 623 (0x26f), region = 36 }
   0xc   : > { %p253_p4 = scmp.lt.s32.totalorder %s3175_s15, 1  ;;  %vm614_vm0 = vsmask.f32 7424  ;;  %s3185_s23 = smov 4   ;;  %vm887_vm1 = vcmask 1046528   ;;  %vm1992_vm2 = vcmask 31744  }
   0xd   : > { %s3186_s24 = smov 8   ;;  %s3187_s25 = smov 12   ;;  %vm2025_vm3 = vcmask 64512   ;;  %vm2058_vm4 = vcmask 97280   ;;  %vm2309_vm5 = vcmask 1041408   ;;  %vm2091_vm6 = vcmask 130048  }
   0xe   : > { %s4519_s15 = smov (!%p253_p4, %s3175_s15), 1  ;;  %s3188_s26 = smov 16   ;;  %vm2124_vm7 = vcmask 162816   ;;  %vm2157_vm8 = vcmask 195584   ;;  %vm2190_vm9 = vcmask 228352   ;;  %vm2223_vm10 = vcmask 261120  }
   0xf   : > { %s3049_s19 = smul.u32 216, %s4519_s15  ;;  %s3189_s27 = smov 24   ;;  %vm2276_vm11 = vcmask 293888  }
  0x10   : > { %s3190_s28 = smov 20   ;;  %s3191_s29 = smov 28  }
  0x11   : > { %s3242_s22 = scalar_lea.vmem %s4503_s0, %s3049_s19  ;;  %s3192_s30 = smov 32  }
  0x12   : > { %v3245_v0 = vld [vmem:[%s3242_s22 + $0x30] sm:$0xff]   ;;  %v322_v1 = vld [vmem:[%s3242_s22 + $0x38] sm:$0x1]  ;;  %v320_v6 = vld [vmem:[%s3242_s22 + $0x20] sm:$0x1]  ;;  %s2846_s19 = sshll.u32 %s4519_s15, 8 }
  0x13   : > { %v3249_v2 = vld [vmem:[%s3242_s22 + $0x18] sm:$0xff]   ;;  %v586_v3 = vunpack.c.l.b16 %v322_v1  ;;  %v664_v4 = vshrl.u32 %v3245_v0, 16  ;;  %v666_v5 = vshll.u32 %v3245_v0, 16  ;;  %v2850_v8 = vld [vmem:[%s3242_s22] sm:$0xff]   ;;  %v584_v9 = vunpack.c.l.b16 %v320_v6  ;;  %v318_v11 = vld [vmem:[%s3242_s22 + $0x8] sm:$0x1] }
  0x14   : > { %v640_v7 = vshrl.u32 %v3249_v2, 16  ;;  %v642_v10 = vshll.u32 %v3249_v2, 16  ;;  %v616_v12 = vshrl.u32 %v2850_v8, 16  ;;  %v618_v13 = vshll.u32 %v2850_v8, 16  ;;  %v3259_v14 = vld [vmem:[%s3242_s22 + $0x60] sm:$0xff]   ;;  %v3289_v42 = vld [vmem:[%s3242_s22 + $0x48] sm:$0xff]  }
  0x15   : > { %v3261_v15 = vpack.c.b16 %v586_v3, %v586_v3  ;;  %v668_v16 = vrot.slane %v666_v5, 1  ;;  %v582_v17 = vunpack.c.l.b16 %v318_v11  ;;  %v326_v18 = vld [vmem:[%s3242_s22 + $0x68] sm:$0x1]  ;;  %v712_v19 = vshrl.u32 %v3259_v14, 16  ;;  %v321_v30 = vld [vmem:[%s3242_s22 + $0x2c] sm:$0x1] }
  0x16   : > { %v3265_v20 = vpack.c.b16 %v584_v9, %v584_v9  ;;  %v644_v21 = vrot.slane %v642_v10, 1  ;;  %v620_v22 = vrot.slane %v618_v13, 1  ;;  %v590_v23 = vunpack.c.l.b16 %v326_v18  ;;  %v3268_v24 = vld [vmem:[%s3242_s22 + $0x24] sm:$0xff]   ;;  %v324_v35 = vld [vmem:[%s3242_s22 + $0x50] sm:$0x1]  ;;  %v3301_v50 = vld [vmem:[%s3242_s22 + $0x3c] sm:$0xff]  }
  0x17   : > { %v3271_v25 = vld [vmem:[%s3242_s22 + $0x24] sm:$0xf0]  ;;  %v3273_v26 = vor.u32 %v668_v16, %v664_v4  ;;  %v671_v27 = vshll.u32 %v3261_v15, 16  ;;  %v3276_v28 = vpack.c.b16 %v582_v17, %v582_v17  ;;  %v714_v29 = vshll.u32 %v3259_v14, 16  ;;  %v3304_v51 = vld [vmem:[%s3242_s22 + $0x3c] sm:$0xf0] }
  0x18   : > { %v3280_v31 = vor.u32 %v644_v21, %v640_v7  ;;  %v647_v32 = vshll.u32 %v3265_v20, 16  ;;  %v621_v33 = vor.u32 %v620_v22, %v616_v12  ;;  %v3283_v34 = vpack.c.b16 %v590_v23, %v590_v23  ;;  %v323_v56 = vld [vmem:[%s3242_s22 + $0x44] sm:$0x1]  ;;  %v3314_v57 = vld [vmem:[%s3242_s22 + $0x54] sm:$0xff]   ;;  %v325_v3 = vld [vmem:[%s3242_s22 + $0x5c] sm:$0x1] }
  0x19   : > { %4510 = vst [vmem:[#allocation2_spill] sm:$0xff] %v3273_v26  ;;  %v673_v36 = vrot.slane %v671_v27, 1  ;;  %v623_v37 = vshll.u32 %v3276_v28, 16  ;;  %v716_v38 = vrot.slane %v714_v29, 1  ;;  %v585_v41 = vunpack.c.l.b16 %v321_v30  ;;  %v3317_v58 = vld [vmem:[%s3242_s22 + $0x54] sm:$0xf0] }
  0x1a   : > { %v649_v39 = vrot.slane %v647_v32, 1  ;;  %v719_v40 = vshll.u32 %v3283_v34, 16  ;;  %v588_v46 = vunpack.c.l.b16 %v324_v35  ;;  %v688_v54 = vshrl.u32 %v3289_v42, 16  ;;  %v3328_v4 = vld [vmem:[%s3242_s22 + $0xc] sm:$0xff]   ;;  %v319_v16 = vld [vmem:[%s3242_s22 + $0x14] sm:$0x1] }
  0x1b   : > { %v674_v43 = vsel %vm614_vm0, %v3273_v26, %v673_v36  ;;  %v625_v44 = vrot.slane %v623_v37, 1  ;;  %v3293_v45 = vor.u32 %v716_v38, %v712_v19  ;;  %v3298_v49 = vpack.c.b16 %v585_v41, %v585_v41  ;;  %v3331_v5 = vld [vmem:[%s3242_s22 + $0xc] sm:$0xf0]  ;;  %v3343_v21 = vld [vmem:[%s3242_s22 + $0x84] sm:$0xff]   ;;  %v329_v36 = vld [vmem:[%s3242_s22 + $0x8c] sm:$0x1] }
  0x1c   : > { %815 = vrot.lane.b32.xlu2 %v674_v43, %s3185_s23  ;;  %v650_v47 = vsel %vm614_vm0, %v3280_v31, %v649_v39  ;;  %v721_v48 = vrot.slane %v719_v40, 1  ;;  %v3308_v53 = vpack.c.b16 %v588_v46, %v588_v46  ;;  %v690_v55 = vshll.u32 %v3289_v42, 16  ;;  %v3346_v22 = vld [vmem:[%s3242_s22 + $0x84] sm:$0xf0]  ;;  %v328_v43 = vld [vmem:[%s3242_s22 + $0x80] sm:$0x1] }
  0x1d   : > { %4511 = vst [vmem:[#allocation3_spill] sm:$0xff] %v3293_v45  ;;  %811 = vrot.lane.b32.xlu1 %v650_v47, %s3185_s23  ;;  %v626_v52 = vsel %vm614_vm0, %v621_v33, %v625_v44  ;;  %v652_v60 = vshrl.u32 %v3268_v24, 16  ;;  %v654_v61 = vshll.u32 %v3268_v24, 16  ;;  %v659_v62 = vshll.u32 %v3298_v49, 16 }
  0x1e   : > { %807 = vrot.lane.b32.xlu0 %v626_v52, %s3185_s23  ;;  %v722_v59 = vsel %vm614_vm0, %v3293_v45, %v721_v48  ;;  %v692_v63 = vrot.slane %v690_v55, 1  ;;  %v695_v1 = vshll.u32 %v3308_v53, 16  ;;  %v587_v8 = vunpack.c.l.b16 %v323_v56  ;;  %v3367_v56 = vld [vmem:[%s3242_s22 + $0x78] sm:$0xff]   ;;  %v3093_v45 = vld [vmem:[%s3242_s22 + $0x24] sm:$0xe] }
  0x1f   : > { %v656_v6 = vrot.slane %v654_v61, 1  ;;  %v661_v7 = vrot.slane %v659_v62, 1  ;;  %v589_v13 = vunpack.c.l.b16 %v325_v3  ;;  %v676_v18 = vshrl.u32 %v3301_v50, 16  ;;  %v327_v3 = vld [vmem:[%s3242_s22 + $0x74] sm:$0x1] }
  0x20   : > { %v3333_v9 = vor.u32 %v692_v63, %v688_v54  ;;  %v697_v10 = vrot.slane %v695_v1, 1  ;;  %v3335_v12 = vpack.c.b16 %v587_v8, %v587_v8  ;;  %v678_v19 = vshll.u32 %v3301_v50, 16  ;;  %v3373_v63 = vld [vmem:[%s3242_s22 + $0x6c] sm:$0xff]  }
  0x21   : > { %v657_v11 = vor.u32 %v656_v6, %v652_v60  ;;  %v3351_v29 = vpack.c.b16 %v589_v13, %v589_v13  ;;  %v700_v32 = vshrl.u32 %v3314_v57, 16  ;;  %v702_v33 = vshll.u32 %v3314_v57, 16  ;;  %v3376_v1 = vld [vmem:[%s3242_s22 + $0x6c] sm:$0xf0] }
  0x22   : > { %v698_v17 = vsel %vm614_vm0, %v3333_v9, %v697_v10  ;;  %v683_v27 = vshll.u32 %v3335_v12, 16  ;;  %v680_v30 = vrot.slane %v678_v19, 1  ;;  %v583_v35 = vunpack.c.l.b16 %v319_v16 }
  0x23   : > { %v662_v23 = vsel %vm614_vm0, %v657_v11, %v661_v7  ;;  %v707_v38 = vshll.u32 %v3351_v29, 16  ;;  %v704_v40 = vrot.slane %v702_v33, 1  ;;  %v628_v46 = vshrl.u32 %v3328_v4, 16 }
  0x24   : > { %823 = vrot.lane.b32.xlu2 %v722_v59, %s3185_s23  ;;  %v685_v37 = vrot.slane %v683_v27, 1  ;;  %v681_v39 = vor.u32 %v680_v30, %v676_v18  ;;  %v3359_v41 = vpack.c.b16 %v583_v35, %v583_v35  ;;  %v630_v47 = vshll.u32 %v3328_v4, 16  ;;  %v332_v18 = vld [vmem:[%s3242_s22 + $0xb0] sm:$0x1]  ;;  %v3390_v27 = vld [vmem:[%s3242_s22 + $0xa8] sm:$0xff]  }
  0x25   : > { %813 = vrot.lane.b32.xlu1 %v662_v23, %s3185_s23  ;;  %v709_v44 = vrot.slane %v707_v38, 1  ;;  %v593_v48 = vunpack.c.l.b16 %v329_v36  ;;  %v705_v54 = vor.u32 %v704_v40, %v700_v32  ;;  %v592_v61 = vunpack.c.l.b16 %v328_v43  ;;  %v3401_v40 = vld [vmem:[%s3242_s22 + $0x9c] sm:$0xf0] }
  0x26   : > { %819 = vrot.lane.b32.xlu0 %v698_v17, %s3185_s23  ;;  %v686_v52 = vsel %vm614_vm0, %v681_v39, %v685_v37  ;;  %v635_v55 = vshll.u32 %v3359_v41, 16  ;;  %v632_v59 = vrot.slane %v630_v47, 1  ;;  %v736_v62 = vshrl.u32 %v3367_v56, 16  ;;  %v3398_v39 = vld [vmem:[%s3242_s22 + $0x9c] sm:$0xff]  }
  0x27   : > { %v3369_v60 = vpack.c.b16 %v593_v48, %v593_v48  ;;  %v710_v6 = vsel %vm614_vm0, %v705_v54, %v709_v44  ;;  %v748_v8 = vshrl.u32 %v3343_v21, 16  ;;  %v750_v10 = vshll.u32 %v3343_v21, 16  ;;  %v331_v48 = vld [vmem:[%s3242_s22 + $0xa4] sm:$0x1] }
  0x28   : > { %v637_v7 = vrot.slane %v635_v55, 1  ;;  %v633_v11 = vor.u32 %v632_v59, %v628_v46  ;;  %v3384_v16 = vpack.c.b16 %v592_v61, %v592_v61  ;;  %v738_v17 = vshll.u32 %v3367_v56, 16  ;;  %v330_v61 = vld [vmem:[%s3242_s22 + $0x98] sm:$0x1] }
  0x29   : > { %v755_v13 = vshll.u32 %v3369_v60, 16  ;;  %v752_v19 = vrot.slane %v750_v10, 1  ;;  %v591_v23 = vunpack.c.l.b16 %v327_v3  ;;  %v596_v38 = vunpack.c.l.b16 %v332_v18 }
  0x2a   : > { %v638_v30 = vsel %vm614_vm0, %v633_v11, %v637_v7  ;;  %v740_v33 = vrot.slane %v738_v17, 1  ;;  %v743_v35 = vshll.u32 %v3384_v16, 16  ;;  %v784_v46 = vshrl.u32 %v3390_v27, 16  ;;  %v3418_v7 = vld [vmem:[%s3242_s22 + $0x90] sm:$0xff]  }
  0x2b   : > { %v757_v32 = vrot.slane %v755_v13, 1  ;;  %v753_v36 = vor.u32 %v752_v19, %v748_v8  ;;  %v3395_v37 = vpack.c.b16 %v591_v23, %v591_v23  ;;  %v786_v47 = vshll.u32 %v3390_v27, 16  ;;  %v3090_v13 = vld [vmem:[%s3242_s22 + $0xc] sm:$0xe] }
  0x2c   : > { %817 = vrot.lane.b32.xlu2 %v686_v52, %s3185_s23  ;;  %v3403_v43 = vor.u32 %v740_v33, %v736_v62  ;;  %v745_v44 = vrot.slane %v743_v35, 1  ;;  %v724_v54 = vshrl.u32 %v3373_v63, 16  ;;  %v726_v55 = vshll.u32 %v3373_v63, 16 }
  0x2d   : > { %821 = vrot.lane.b32.xlu1 %v710_v6, %s3185_s23  ;;  %v758_v52 = vsel %vm614_vm0, %v753_v36, %v757_v32  ;;  %v731_v59 = vshll.u32 %v3395_v37, 16  ;;  %v3415_v3 = vpack.c.b16 %v596_v38, %v596_v38  ;;  %v788_v6 = vrot.slane %v786_v47, 1 }
  0x2e   : > { %809 = vrot.lane.b32.xlu0 %v638_v30, %s3185_s23  ;;  %v746_v62 = vsel %vm614_vm0, %v3403_v43, %v745_v44  ;;  %v728_v8 = vrot.slane %v726_v55, 1  ;;  %v595_v11 = vunpack.c.l.b16 %v331_v48  ;;  %v594_v19 = vunpack.c.l.b16 %v330_v61  ;;  %v3437_v48 = vld [vmem:[%s3242_s22 + $0xb4] sm:$0xff]   ;;  %v2969_v61 = vld [vmem:[%s3242_s22] sm:$0xe] }
  0x2f   : > { %v733_v10 = vrot.slane %v731_v59, 1  ;;  %v3422_v17 = vor.u32 %v788_v6, %v784_v46  ;;  %v791_v18 = vshll.u32 %v3415_v3, 16  ;;  %v762_v32 = vshll.u32 %v3418_v7, 16  ;;  %v2968_v59 = vld [vmem:[%s3242_s22] sm:$0xf0] }
  0x30   : > { %v729_v23 = vor.u32 %v728_v8, %v724_v54  ;;  %v3426_v30 = vpack.c.b16 %v595_v11, %v595_v11  ;;  %v3429_v35 = vpack.c.b16 %v594_v19, %v594_v19  ;;  %v760_v36 = vshrl.u32 %v3418_v7, 16  ;;  %v333_v11 = vld [vmem:[%s3242_s22 + $0xbc] sm:$0x1] }
  0x31   : > { %v793_v33 = vrot.slane %v791_v18, 1  ;;  %v772_v44 = vshrl.u32 %v3398_v39, 16  ;;  %v774_v46 = vshll.u32 %v3398_v39, 16  ;;  %v764_v54 = vrot.slane %v762_v32, 1 }
  0x32   : > { %v734_v38 = vsel %vm614_vm0, %v729_v23, %v733_v10  ;;  %v779_v47 = vshll.u32 %v3426_v30, 16  ;;  %v767_v55 = vshll.u32 %v3429_v35, 16  ;;  %v3091_v10 = vor.u32 %v3090_v13, %v3331_v5 }
  0x33   : > { %v776_v6 = vrot.slane %v774_v46, 1  ;;  %v3450_v18 = vor.u32 %v764_v54, %v760_v36  ;;  %v2970_v32 = vor.u32 %v2969_v61, %v2968_v59  ;;  %v597_v26 = vunpack.c.l.b16 %v333_v11 }
  0x34   : > { %829 = vrot.lane.b32.xlu2 %v758_v52, %s3185_s23  ;;  %v3440_v52 = vld [vmem:[%s3242_s22 + $0xb4] sm:$0xf0]  ;;  %v781_v8 = vrot.slane %v779_v47, 1  ;;  %v769_v19 = vrot.slane %v767_v55, 1  ;;  %v891_v5 = vrot.slane %v3091_v10, 1  ;;  %v889_v13 = vrot.slane %v3276_v28, 1 }
  0x35   : > { %827 = vrot.lane.b32.xlu1 %v746_v62, %s3185_s23  ;;  %v794_v62 = vsel %vm614_vm0, %v3422_v17, %v793_v33  ;;  %v777_v23 = vor.u32 %v776_v6, %v772_v44  ;;  %v3460_v36 = vpack.c.b16 %v597_v26, %v597_v26  ;;  %v2974_v44 = vld [vmem:[%s3242_s22 + $0x30] sm:$0xf0]  ;;  %v888_v47 = vrot.slane %v2970_v32, 1  ;;  %v2972_v26 = vld [vmem:[%s3242_s22 + $0x18] sm:$0xe] }
  0x36   : > { %825 = vrot.lane.b32.xlu0 %v734_v38, %s3185_s23  ;;  %v892_v38 = vrot.slane %v3359_v41, 1  ;;  %v770_v46 = vsel %vm614_vm0, %v3450_v18, %v769_v19  ;;  %v2975_v41 = vld [vmem:[%s3242_s22 + $0x30] sm:$0xe]  ;;  %v796_v54 = vshrl.u32 %v3437_v48, 16  ;;  %v798_v55 = vshll.u32 %v3437_v48, 16 }
  0x37   : > { %v782_v33 = vsel %vm614_vm0, %v777_v23, %v781_v8  ;;  %v803_v59 = vshll.u32 %v3460_v36, 16  ;;  %v2976_v6 = vor.u32 %v2975_v41, %v2974_v44  ;;  %v2971_v8 = vld [vmem:[%s3242_s22 + $0x18] sm:$0xf0]  ;;  %v3096_v10 = vld [vmem:[%s3242_s22 + $0x54] sm:$0xe]  ;;  %v890_v11 = vsel %vm887_vm1, %v888_v47, %v889_v13 }
  0x38   : > { %v893_v61 = vsel %vm887_vm1, %v891_v5, %v892_v38  ;;  %v3094_v23 = vor.u32 %v3093_v45, %v3271_v25  ;;  %v901_v32 = vrot.slane %v3261_v15, 1  ;;  %v3099_v5 = vld [vmem:[%s3242_s22 + $0x3c] sm:$0xe]  ;;  %v898_v13 = vrot.slane %v3298_v49, 1  ;;  %v2977_v45 = vld [vmem:[%s3242_s22 + $0x48] sm:$0xf0] }
  0x39   : > { %v805_v28 = vrot.slane %v803_v59, 1  ;;  %v895_v25 = vrot.slane %v3265_v20, 1  ;;  %v2978_v41 = vld [vmem:[%s3242_s22 + $0x48] sm:$0xe]  ;;  %v3102_v49 = vld [vmem:[%s3242_s22 + $0x6c] sm:$0xe] }
  0x3a   : > { %v897_v44 = vrot.slane %v3094_v23, 1  ;;  %v2979_v59 = vor.u32 %v2978_v41, %v2977_v45  ;;  %v913_v45 = vrot.slane %v3283_v34, 1  ;;  %v2987_v41 = vld [vmem:[%s3242_s22 + $0x90] sm:$0xe] }
  0x3c   : > { %835 = vrot.lane.b32.xlu2 %v794_v62, %s3185_s23  ;;  %v800_v62 = vrot.slane %v798_v55, 1  ;;  %v899_v55 = vsel %vm887_vm1, %v897_v44, %v898_v13 }
  0x3d   : > { %833 = vrot.lane.b32.xlu1 %v782_v33, %s3185_s23  ;;  %v900_v33 = vrot.slane %v2976_v6, 1  ;;  %v3100_v6 = vor.u32 %v3099_v5, %v3304_v51  ;;  %v3105_v51 = vld [vmem:[%s3242_s22 + $0x9c] sm:$0xe] }
  0x3e   : > { %831 = vrot.lane.b32.xlu0 %v770_v46, %s3185_s23  ;;  %v801_v19 = vor.u32 %v800_v62, %v796_v54  ;;  %v2973_v46 = vor.u32 %v2972_v26, %v2971_v8  ;;  %v3097_v54 = vor.u32 %v3096_v10, %v3317_v58  ;;  %v910_v62 = vrot.slane %v3351_v29, 1  ;;  %v2983_v8 = vld [vmem:[%s3242_s22 + $0x78] sm:$0xf0]  ;;  %v2984_v58 = vld [vmem:[%s3242_s22 + $0x78] sm:$0xe] }
  0x3f   : > { %v902_v15 = vsel %vm887_vm1, %v900_v33, %v901_v32  ;;  %v907_v26 = vrot.slane %v3308_v53, 1  ;;  %v2985_v23 = vor.u32 %v2984_v58, %v2983_v8  ;;  %v2980_v32 = vld [vmem:[%s3242_s22 + $0x60] sm:$0xf0]  ;;  %v2981_v29 = vld [vmem:[%s3242_s22 + $0x60] sm:$0xe]  ;;  %v3103_v33 = vor.u32 %v3102_v49, %v3376_v1  ;;  %v3528_v58 = vld [vmem:[%s3242_s22 + $0xc] sm:$0xff]  }
  0x40   : > { %v806_v38 = vsel %vm614_vm0, %v801_v19, %v805_v28  ;;  %v894_v47 = vrot.slane %v2973_v46, 1  ;;  %v909_v20 = vrot.slane %v3097_v54, 1  ;;  %v906_v28 = vrot.slane %v2979_v59, 1  ;;  %v2986_v1 = vld [vmem:[%s3242_s22 + $0x90] sm:$0xf0] }
  0x41   : > { %v904_v19 = vrot.slane %v3335_v12, 1  ;;  %v919_v53 = vrot.slane %v3384_v16, 1  ;;  %v918_v5 = vrot.slane %v2985_v23, 1  ;;  %v2982_v44 = vor.u32 %v2981_v29, %v2980_v32  ;;  %v3108_v12 = vld [vmem:[%s3242_s22 + $0x84] sm:$0xe] }
  0x42   : > { %v911_v10 = vsel %vm887_vm1, %v909_v20, %v910_v62  ;;  %v915_v13 = vrot.slane %v3103_v33, 1  ;;  %v928_v49 = vrot.slane %v3426_v30, 1  ;;  %v925_v20 = vrot.slane %v3429_v35, 1  ;;  %v2989_v30 = vld [vmem:[%s3242_s22 + $0xa8] sm:$0xf0]  ;;  %v3545_v29 = vld [vmem:[%s3242_s22 + $0x24] sm:$0xff]  }
  0x43   : > { %v912_v16 = vrot.slane %v2982_v44, 1  ;;  %v922_v8 = vrot.slane %v3369_v60, 1  ;;  %v931_v32 = vrot.slane %v3415_v3, 1  ;;  %v3556_v3 = vld [vmem:[%s3242_s22 + $0x54] sm:$0xff]   ;;  %v3564_v33 = vld [vmem:[%s3242_s22 + $0x3c] sm:$0xff]  }
  0x44   : > { %938 = vrot.lane.b32.xlu2 %v893_v61, %s3186_s24  ;;  %v896_v61 = vsel %vm887_vm1, %v894_v47, %v895_v25  ;;  %v916_v25 = vrot.slane %v3395_v37, 1  ;;  %v3106_v47 = vor.u32 %v3105_v51, %v3401_v40  ;;  %v3111_v37 = vld [vmem:[%s3242_s22 + $0xb4] sm:$0xe]  ;;  %v3548_v51 = vld [vmem:[%s3242_s22 + $0x24] sm:$0xf0] }
  0x45   : > { %936 = vrot.lane.b32.xlu1 %v890_v11, %s3186_s24  ;;  %v903_v11 = vrot.slane %v3100_v6, 1  ;;  %v914_v59 = vsel %vm887_vm1, %v912_v16, %v913_v45  ;;  %v3577_v44 = vld [vmem:[%s3242_s22 + $0x6c] sm:$0xf0]  ;;  %v3597_v45 = vld [vmem:[%s3242_s22 + $0x84] sm:$0xf0] }
  0x46   : > { %837 = vrot.lane.b32.xlu0 %v806_v38, %s3185_s23  ;;  %v908_v38 = vsel %vm887_vm1, %v906_v28, %v907_v26  ;;  %v917_v54 = vsel %vm887_vm1, %v915_v13, %v916_v25  ;;  %v927_v34 = vrot.slane %v3106_v47, 1  ;;  %v3531_v28 = vld [vmem:[%s3242_s22 + $0xc] sm:$0xf0]  ;;  %v2716_v13 = vld [vmem:[%s3242_s22 + $0x9c] sm:$0xff]   ;;  %v3594_v25 = vld [vmem:[%s3242_s22 + $0x84] sm:$0xff]  }
  0x47   : > { %v905_v46 = vsel %vm887_vm1, %v903_v11, %v904_v19  ;;  %v934_v19 = vrot.slane %v3460_v36, 1  ;;  %v2724_v16 = vld [vmem:[%s3242_s22 + $0x14] sm:$0x1] }
  0x48   : > { %v929_v62 = vsel %vm887_vm1, %v927_v34, %v928_v49  ;;  %v3608_v47 = vld [vmem:[%s3242_s22 + $0xb4] sm:$0xff]   ;;  %v1096_v34 = vunpack.c.l.b16 %v2724_v16 }
  0x4c   : > { %944 = vrot.lane.b32.xlu2 %v902_v15, %s3186_s24  ;;  %v920_v15 = vsel %vm887_vm1, %v918_v5, %v919_v53  ;;  %v3567_v53 = vld [vmem:[%s3242_s22 + $0x3c] sm:$0xf0]  ;;  %v2708_v5 = vld [vmem:[%s3242_s22 + $0x6c] sm:$0xff]  }
  0x4d   : > { %942 = vrot.lane.b32.xlu1 %v899_v55, %s3186_s24  ;;  %v2988_v55 = vor.u32 %v2987_v41, %v2986_v1  ;;  %v2732_v41 = vld [vmem:[%s3242_s22 + $0x74] sm:$0x1] }
  0x4e   : > { %940 = vrot.lane.b32.xlu0 %v896_v61, %s3186_s24  ;;  %v3109_v61 = vor.u32 %v3108_v12, %v3346_v22  ;;  %v2990_v22 = vld [vmem:[%s3242_s22 + $0xa8] sm:$0xe] }
  0x4f   : > { %v924_v40 = vrot.slane %v2988_v55, 1  ;;  %v2991_v11 = vor.u32 %v2990_v22, %v2989_v30  ;;  %v1104_v55 = vunpack.c.l.b16 %v2732_v41 }
  0x50   : > { %v921_v6 = vrot.slane %v3109_v61, 1 }
  0x51   : > { %v926_v26 = vsel %vm887_vm1, %v924_v40, %v925_v20  ;;  %v930_v23 = vrot.slane %v2991_v11, 1  ;;  %v3622_v40 = vpack.c.b16 %v1104_v55, %v1104_v55  ;;  %v1131_v20 = vshll.u32 %v3528_v58, 16 }
  0x52   : > { %v923_v35 = vsel %vm887_vm1, %v921_v6, %v922_v8  ;;  %v3630_v6 = vld [vmem:[%s3242_s22 + $0xc0] sm:$0xff]   ;;  %v1273_v8 = vshrl.u32 %v2716_v13, 16 }
  0x53   : > { %v932_v36 = vsel %vm887_vm1, %v930_v23, %v931_v32  ;;  %v1232_v11 = vshll.u32 %v3622_v40, 16  ;;  %v3114_v23 = vld [vmem:[%s3242_s22 + $0x9c] sm:$0xe] }
  0x54   : > { %950 = vrot.lane.b32.xlu2 %v911_v10, %s3186_s24  ;;  %v3112_v10 = vor.u32 %v3111_v37, %v3440_v52  ;;  %v1275_v37 = vshll.u32 %v2716_v13, 16 }
  0x55   : > { %948 = vrot.lane.b32.xlu1 %v908_v38, %s3186_s24  ;;  %v3559_v38 = vld [vmem:[%s3242_s22 + $0x54] sm:$0xf0]  ;;  %v1234_v16 = vrot.slane %v1232_v11, 1 }
  0x56   : > { %946 = vrot.lane.b32.xlu0 %v905_v46, %s3186_s24  ;;  %v933_v60 = vrot.slane %v3112_v10, 1  ;;  %v1277_v30 = vrot.slane %v1275_v37, 1  ;;  %v1225_v10 = vshrl.u32 %v2708_v5, 16  ;;  %v2796_v37 = vld [vmem:[%s3242_s22 + $0x80] sm:$0x1] }
  0x58   : > { %v935_v52 = vsel %vm887_vm1, %v933_v60, %v934_v19  ;;  %v1129_v60 = vshrl.u32 %v3528_v58, 16  ;;  %v1133_v19 = vrot.slane %v1131_v20, 1  ;;  %v1278_v32 = vor.u32 %v1277_v30, %v1273_v8 }
  0x5a   : > { %v1134_v55 = vor.u32 %v1133_v19, %v1129_v60  ;;  %v2728_v19 = vld [vmem:[%s3242_s22 + $0x44] sm:$0x1] }
  0x5c   : > { %956 = vrot.lane.b32.xlu2 %v920_v15, %s3186_s24 }
  0x5d   : > { %954 = vrot.lane.b32.xlu1 %v917_v54, %s3186_s24  ;;  %v3611_v54 = vld [vmem:[%s3242_s22 + $0xb4] sm:$0xf0] }
  0x5e   : > { %952 = vrot.lane.b32.xlu0 %v914_v59, %s3186_s24 }
  0x64   : > { %962 = vrot.lane.b32.xlu2 %v929_v62, %s3186_s24 }
  0x65   : > { %960 = vrot.lane.b32.xlu1 %v926_v26, %s3186_s24  ;;  %v3633_v26 = vpack.c.b16 %v1096_v34, %v1096_v34 }
  0x66   : > { %958 = vrot.lane.b32.xlu0 %v923_v35, %s3186_s24 }
  0x6c   : > { %1048 = vrot.lane.b32.xlu2 %v3528_v58, %s3187_s25 }
  0x6d   : > { %966 = vrot.lane.b32.xlu1 %v935_v52, %s3186_s24 }
  0x6e   : > { %964 = vrot.lane.b32.xlu0 %v932_v36, %s3186_s24  ;;  %v1136_v36 = vshll.u32 %v3633_v26, 16 }
  0x74   : > { %1054 = vrot.lane.b32.xlu2 %v3245_v0, %s3187_s25 }
  0x75   : > { %1052 = vrot.lane.b32.xlu1 %v3545_v29, %s3187_s25 }
  0x76   : > { %v3571_v46 = vpop.permute.xlu2 %815  ;;  %1050 = vrot.lane.b32.xlu0 %v3249_v2, %s3187_s25  ;;  %v3589_v2 = vld [vmem:[%s3242_s22 + $0x9c] sm:$0xf0] }
  0x77   : > { %v3115_v30 = vor.u32 %v3114_v23, %v3589_v2 }
  0x7c   : > { %1060 = vrot.lane.b32.xlu2 %v3556_v3, %s3187_s25 }
  0x7d   : > { %1058 = vrot.lane.b32.xlu1 %v3289_v42, %s3187_s25  ;;  %v2736_v42 = vld [vmem:[%s3242_s22 + $0xa4] sm:$0x1] }
  0x7e   : > { %v3583_v12 = vpop.permute.xlu2 %823  ;;  %1056 = vrot.lane.b32.xlu0 %v3564_v33, %s3187_s25  ;;  %v1108_v15 = vunpack.c.l.b16 %v2736_v42  ;;  %v2800_v42 = vld [vmem:[%s3242_s22 + $0xb0] sm:$0x1] }
  0x7f   : > { %v1620_v20 = vunpack.c.l.b16 %v2800_v42 }
  0x80   : > { %v3614_v59 = vpack.c.b16 %v1108_v15, %v1108_v15 }
  0x81   : > { %v3660_v11 = vpack.c.b16 %v1620_v20, %v1620_v20 }
  0x82   : > { %v1280_v22 = vshll.u32 %v3614_v59, 16 }
  0x84   : > { %1066 = vrot.lane.b32.xlu2 %v3367_v56, %s3187_s25  ;;  %v1282_v52 = vrot.slane %v1280_v22, 1  ;;  %v1616_v22 = vunpack.c.l.b16 %v2796_v37 }
  0x85   : > { %1064 = vrot.lane.b32.xlu1 %v2708_v5, %s3187_s25 }
  0x86   : > { %v3600_v1 = vpop.permute.xlu2 %817  ;;  %1062 = vrot.lane.b32.xlu0 %v3259_v14, %s3187_s25  ;;  %v1227_v14 = vshll.u32 %v2708_v5, 16  ;;  %v3117_v5 = vld [vmem:[%s3242_s22 + $0x6c] sm:$0xe]  ;;  %v1283_v34 = vsel %vm614_vm0, %v1278_v32, %v1282_v52  ;;  %v1436_v52 = vrot.slane %v3115_v30, 1  ;;  %v3665_v42 = vpack.c.b16 %v1616_v22, %v1616_v22 }
  0x88   : > { %v1229_v35 = vrot.slane %v1227_v14, 1  ;;  %v1138_v14 = vrot.slane %v1136_v36, 1  ;;  %v1437_v36 = vrot.slane %v3614_v59, 1  ;;  %v1744_v59 = vshll.u32 %v3665_v42, 16 }
  0x8a   : > { %v1230_v15 = vor.u32 %v1229_v35, %v1225_v10  ;;  %v1139_v10 = vsel %vm614_vm0, %v1134_v55, %v1138_v14  ;;  %v3118_v35 = vor.u32 %v3117_v5, %v3577_v44  ;;  %v1425_v44 = vrot.slane %v3622_v40, 1 }
  0x8b   : > { %v1792_v5 = vshll.u32 %v3660_v11, 16  ;;  %v1438_v55 = vsel %vm887_vm1, %v1436_v52, %v1437_v36  ;;  %v1179_v40 = vshll.u32 %v3564_v33, 16 }
  0x8c   : > { %1072 = vrot.lane.b32.xlu2 %v2716_v13, %s3187_s25  ;;  %v1235_v8 = vsel %vm614_vm0, %v1230_v15, %v1234_v16  ;;  %v1424_v23 = vrot.slane %v3118_v35, 1  ;;  %v1100_v15 = vunpack.c.l.b16 %v2728_v19  ;;  %v3034_v35 = vld [vmem:[%s3242_s22 + $0xa8] sm:$0xf0] }
  0x8d   : > { %1070 = vrot.lane.b32.xlu1 %v3418_v7, %s3187_s25  ;;  %v1794_v14 = vrot.slane %v1792_v5, 1 }
  0x8e   : > { %v3618_v49 = vpop.permute.xlu2 %829  ;;  %1068 = vrot.lane.b32.xlu0 %v3594_v25, %s3187_s25  ;;  %v3681_v20 = vpack.c.b16 %v1100_v15, %v1100_v15  ;;  %v3120_v15 = vld [vmem:[%s3242_s22 + $0x3c] sm:$0xe] }
  0x8f   : > { %v3620_v61 = vpop.permute.xlu1 %811  ;;  %v1795_v19 = vsel %vm614_vm0, %v3422_v17, %v1794_v14  ;;  %v2792_v14 = vld [vmem:[%s3242_s22 + $0x50] sm:$0x1] }
  0x90   : > { %v3627_v62 = vpop.permute.xlu0 %807  ;;  %v1184_v52 = vshll.u32 %v3681_v20, 16 }
  0x94   : > { %1078 = vrot.lane.b32.xlu2 %v3630_v6, %s3187_s25 }
  0x95   : > { %1076 = vrot.lane.b32.xlu1 %v3608_v47, %s3187_s25 }
  0x96   : > { %v3643_v13 = vpop.permute.xlu2 %835  ;;  %1074 = vrot.lane.b32.xlu0 %v3390_v27, %s3187_s25 }
  0x97   : > { %v3647_v41 = vpop.permute.xlu1 %813 }
  0x98   : > { %v3651_v58 = vpop.permute.xlu0 %819 }
  0x9c   : > { %1344 = vrot.lane.b32.xlu2 %v1283_v34, %s3188_s26  ;;  %v1426_v34 = vsel %vm887_vm1, %v1424_v23, %v1425_v44  ;;  %v3029_v23 = vld [vmem:[%s3242_s22 + $0x78] sm:$0xe] }
  0x9d   : > { %1336 = vrot.lane.b32.xlu1 %v1235_v8, %s3188_s26 }
  0x9e   : > { %v939_v60 = vpop.permute.xlu2 %938  ;;  %1320 = vrot.lane.b32.xlu0 %v1139_v10, %s3188_s26  ;;  %v1746_v10 = vrot.slane %v1744_v59, 1  ;;  %v3123_v59 = vld [vmem:[%s3242_s22 + $0xc] sm:$0xe] }
  0x9f   : > { %v822_v32 = vpop.permute.xlu1 %821 }
  0xa0   : > { %v810_v2 = vpop.permute.xlu0 %809  ;;  %v1747_v44 = vsel %vm614_vm0, %v3403_v43, %v1746_v10  ;;  %v1949_v10 = vrot.slane %v3660_v11, 1  ;;  %v3121_v11 = vor.u32 %v3120_v15, %v3567_v53  ;;  %v2733_v15 = vld [vmem:[%s3242_s22 + $0x80] sm:$0x1] }
  0xa1   : > { %v1996_v16 = vsel %vm1992_vm2, %v3328_v4, %v810_v2  ;;  %v2002_v4 = vsel %vm1992_vm2, %v3245_v0, %v3571_v46  ;;  %v1177_v0 = vshrl.u32 %v3564_v33, 16  ;;  %v1181_v46 = vrot.slane %v1179_v40, 1  ;;  %v3028_v2 = vld [vmem:[%s3242_s22 + $0x78] sm:$0xf0] }
  0xa2   : > { %v3677_v37 = vsel %vm2025_vm3, %v1996_v16, %v939_v60  ;;  %v3035_v60 = vld [vmem:[%s3242_s22 + $0xa8] sm:$0xe]  ;;  %v3030_v33 = vor.u32 %v3029_v23, %v3028_v2  ;;  %v2008_v40 = vsel %vm1992_vm2, %v3314_v57, %v822_v32  ;;  %v1937_v57 = vrot.slane %v3665_v42, 1  ;;  %v2960_v23 = vld [vmem:[%s3242_s22 + $0x18] sm:$0xff]  }
  0xa3   : > { %v3036_v5 = vor.u32 %v3035_v60, %v3034_v35  ;;  %v1182_v16 = vor.u32 %v1181_v46, %v1177_v0  ;;  %v2788_v60 = vld [vmem:[%s3242_s22 + $0x20] sm:$0x1]  ;;  %v1612_v32 = vunpack.c.l.b16 %v2792_v14  ;;  %v1643_v53 = vshll.u32 %v2960_v23, 16 }
  0xa4   : > { %1576 = vrot.lane.b32.xlu2 %v3367_v56, %s3189_s27  ;;  %v1936_v0 = vrot.slane %v3030_v33, 1  ;;  %v3084_v14 = vld [vmem:[%s3242_s22] sm:$0xff]  }
  0xa5   : > { %1472 = vrot.lane.b32.xlu1 %v1438_v55, %s3190_s28  ;;  %v1186_v55 = vrot.slane %v1184_v52, 1  ;;  %v3722_v52 = vld [vmem:[%s3242_s22 + $0x48] sm:$0xff]   ;;  %v3730_v42 = vpack.c.b16 %v1612_v32, %v1612_v32 }
  0xa6   : > { %v945_v8 = vpop.permute.xlu2 %944  ;;  %1464 = vrot.lane.b32.xlu0 %v1426_v34, %s3190_s28 }
  0xa7   : > { %v828_v30 = vpop.permute.xlu1 %827  ;;  %v3688_v22 = vsel %vm2025_vm3, %v2002_v4, %v945_v8  ;;  %v1948_v8 = vrot.slane %v3036_v5, 1  ;;  %v1938_v5 = vsel %vm887_vm1, %v1936_v0, %v1937_v57  ;;  %v1696_v57 = vshll.u32 %v3730_v42, 16 }
  0xa8   : > { %v3697_v36 = vpop.permute.xlu0 %825 }
  0xa9   : > { %v1950_v2 = vsel %vm887_vm1, %v1948_v8, %v1949_v10  ;;  %v1994_v8 = vsel %vm1992_vm2, %v3084_v14, %v3627_v62  ;;  %v1401_v10 = vrot.slane %v3633_v26, 1  ;;  %v3016_v14 = vld [vmem:[%s3242_s22 + $0x18] sm:$0xf0] }
  0xac   : > { %1856 = vrot.lane.b32.xlu2 %v1795_v19, %s3191_s29  ;;  %v1187_v19 = vsel %vm614_vm0, %v1182_v16, %v1186_v55  ;;  %v1691_v16 = vshll.u32 %v3722_v52, 16  ;;  %v2014_v55 = vsel %vm1992_vm2, %v3367_v56, %v828_v30 }
  0xad   : > { %1848 = vrot.lane.b32.xlu1 %v1747_v44, %s3191_s29  ;;  %v1608_v44 = vunpack.c.l.b16 %v2788_v60  ;;  %v1689_v60 = vshrl.u32 %v3722_v52, 16 }
  0xae   : > { %v951_v34 = vpop.permute.xlu2 %950  ;;  %1584 = vrot.lane.b32.xlu0 %v3390_v27, %s3189_s27  ;;  %v3124_v27 = vor.u32 %v3123_v59, %v3531_v28  ;;  %v1413_v28 = vrot.slane %v3681_v20, 1  ;;  %v1693_v0 = vrot.slane %v1691_v16, 1  ;;  %v1105_v20 = vunpack.c.l.b16 %v2733_v15 }
  0xaf   : > { %v3711_v4 = vsel %vm2025_vm3, %v2008_v40, %v951_v34  ;;  %v834_v35 = vpop.permute.xlu1 %833  ;;  %v1412_v34 = vrot.slane %v3121_v11, 1  ;;  %v3741_v59 = vpack.c.b16 %v1608_v44, %v1608_v44  ;;  %v1645_v11 = vrot.slane %v1643_v53, 1 }
  0xb0   : > { %v3719_v46 = vpop.permute.xlu0 %831  ;;  %v1400_v30 = vrot.slane %v3124_v27, 1  ;;  %v1694_v27 = vor.u32 %v1693_v0, %v1689_v60  ;;  %v3757_v16 = vpack.c.b16 %v1105_v20, %v1105_v20  ;;  %v2737_v60 = vld [vmem:[%s3242_s22 + $0xb0] sm:$0x1]  ;;  %v3085_v0 = vld [vmem:[%s3242_s22 + $0x18] sm:$0xff]   ;;  %v3784_v20 = vld [vmem:[%s3242_s22 + $0x84] sm:$0xf0] }
  0xb1   : > { %v1414_v62 = vsel %vm887_vm1, %v1412_v34, %v1413_v28  ;;  %v1648_v44 = vshll.u32 %v3741_v59, 16  ;;  %v2000_v34 = vsel %vm1992_vm2, %v3268_v24, %v3647_v41  ;;  %v1998_v24 = vsel %vm1992_vm2, %v3085_v0, %v3620_v61  ;;  %v3010_v61 = vld [vmem:[%s3242_s22 + $0xa8] sm:$0xf0]  ;;  %v3005_v0 = vld [vmem:[%s3242_s22 + $0x78] sm:$0xe] }
  0xb2   : > { %v1402_v26 = vsel %vm887_vm1, %v1400_v30, %v1401_v10  ;;  %v1244_v30 = vshll.u32 %v3757_v16, 16  ;;  %v3017_v10 = vld [vmem:[%s3242_s22 + $0x18] sm:$0xe] }
  0xb4   : > { %1328 = vrot.lane.b32.xlu2 %v1187_v19, %s3188_s26 }
  0xb5   : > { %1984 = vrot.lane.b32.xlu1 %v1950_v2, %s3192_s30  ;;  %v1641_v2 = vshrl.u32 %v2960_v23, 16 }
  0xb6   : > { %v957_v33 = vpop.permute.xlu2 %956  ;;  %1976 = vrot.lane.b32.xlu0 %v1938_v5, %s3192_s30  ;;  %v1698_v5 = vrot.slane %v1696_v57, 1  ;;  %v3781_v57 = vld [vmem:[%s3242_s22 + $0x84] sm:$0xff]  }
  0xb7   : > { %v3738_v40 = vsel %vm2025_vm3, %v2014_v55, %v957_v33  ;;  %v937_v56 = vpop.permute.xlu1 %936  ;;  %v2020_v55 = vsel %vm1992_vm2, %v3398_v39, %v834_v35  ;;  %v1646_v53 = vor.u32 %v1645_v11, %v1641_v2  ;;  %v3022_v39 = vld [vmem:[%s3242_s22 + $0x48] sm:$0xf0]  ;;  %v3023_v35 = vld [vmem:[%s3242_s22 + $0x48] sm:$0xe] }
  0xb8   : > { %v2027_v19 = vsel %vm2025_vm3, %v1994_v8, %v937_v56  ;;  %v3751_v32 = vpop.permute.xlu0 %837  ;;  %v1699_v56 = vsel %vm614_vm0, %v1694_v27, %v1698_v5  ;;  %v1246_v27 = vrot.slane %v1244_v30, 1  ;;  %v3011_v5 = vld [vmem:[%s3242_s22 + $0xa8] sm:$0xe] }
  0xbc   : > { %1560 = vrot.lane.b32.xlu2 %v2960_v23, %s3189_s27  ;;  %v1650_v23 = vrot.slane %v1648_v44, 1  ;;  %v3018_v44 = vor.u32 %v3017_v10, %v3016_v14  ;;  %v3012_v10 = vor.u32 %v3011_v5, %v3010_v61  ;;  %v3823_v5 = vld [vmem:[%s3242_s22 + $0xb4] sm:$0xff]  }
  0xbd   : > { %1456 = vrot.lane.b32.xlu1 %v1414_v62, %s3190_s28  ;;  %v3024_v62 = vor.u32 %v3023_v35, %v3022_v39  ;;  %v1925_v39 = vrot.slane %v3730_v42, 1 }
  0xbe   : > { %v963_v33 = vpop.permute.xlu2 %962  ;;  %1448 = vrot.lane.b32.xlu0 %v1402_v26, %s3190_s28  ;;  %v1651_v11 = vsel %vm614_vm0, %v1646_v53, %v1650_v23  ;;  %v1109_v26 = vunpack.c.l.b16 %v2737_v60  ;;  %v1912_v14 = vrot.slane %v3018_v44, 1  ;;  %v3004_v60 = vld [vmem:[%s3242_s22 + $0x78] sm:$0xf0] }
  0xbf   : > { %v3763_v15 = vsel %vm2025_vm3, %v2020_v55, %v963_v33  ;;  %v943_v28 = vpop.permute.xlu1 %942  ;;  %v2797_v33 = vld [vmem:[%s3242_s22 + $0x8c] sm:$0x1]  ;;  %v1924_v23 = vrot.slane %v3024_v62, 1  ;;  %v1439_v62 = vrot.slane %v3012_v10, 1 }
  0xc0   : > { %v2033_v8 = vsel %vm2025_vm3, %v2000_v34, %v943_v28  ;;  %v941_v41 = vpop.permute.xlu0 %940  ;;  %v3086_v34 = vld [vmem:[%s3242_s22 + $0x48] sm:$0xff]   ;;  %v1125_v30 = vpack.c.b16 %v1109_v26, %v1109_v26 }
  0xc1   : > { %v3787_v2 = vsel %vm2025_vm3, %v1998_v24, %v941_v41  ;;  %v2006_v28 = vsel %vm1992_vm2, %v3086_v34, %v3651_v58  ;;  %v1617_v24 = vunpack.c.l.b16 %v2797_v33 }
  0xc2   : > { %v1440_v44 = vrot.slane %v1125_v30, 1  ;;  %v1292_v26 = vshll.u32 %v1125_v30, 16 }
  0xc4   : > { %1840 = vrot.lane.b32.xlu2 %v1699_v56, %s3191_s29  ;;  %v1913_v56 = vrot.slane %v3741_v59, 1  ;;  %v1926_v59 = vsel %vm887_vm1, %v1924_v23, %v1925_v39  ;;  %v1441_v39 = vsel %vm887_vm1, %v1439_v62, %v1440_v44  ;;  %v2018_v44 = vsel %vm1992_vm2, %v3418_v7, %v3719_v46 }
  0xc5   : > { %1832 = vrot.lane.b32.xlu1 %v1651_v11, %s3191_s29  ;;  %v3006_v11 = vor.u32 %v3005_v0, %v3004_v60  ;;  %v3126_v60 = vld [vmem:[%s3242_s22 + $0xb4] sm:$0xe]  ;;  %v2016_v7 = vsel %vm1992_vm2, %v3343_v21, %v3618_v49  ;;  %v2992_v49 = vld [vmem:[%s3242_s22 + $0x18] sm:$0xf0] }
  0xc6   : > { %v1049_v55 = vpop.permute.xlu2 %1048  ;;  %1568 = vrot.lane.b32.xlu0 %v3722_v52, %s3189_s27  ;;  %v2004_v52 = vsel %vm1992_vm2, %v3301_v50, %v3600_v1  ;;  %v1914_v61 = vsel %vm887_vm1, %v1912_v14, %v1913_v56  ;;  %v3125_v50 = vld [vmem:[%s3242_s22 + $0xb4] sm:$0xf0]  ;;  %v1749_v56 = vshrl.u32 %v3781_v57, 16 }
  0xc7   : > { %v3799_v53 = vsel %vm2058_vm4, %v2027_v19, %v1049_v55  ;;  %v949_v35 = vpop.permute.xlu1 %948  ;;  %v1247_v19 = vsel %vm614_vm0, %v3403_v43, %v1246_v27  ;;  %v3819_v43 = vpack.c.b16 %v1617_v24, %v1617_v24  ;;  %v1751_v27 = vshll.u32 %v3781_v57, 16 }
  0xc8   : > { %v2039_v58 = vsel %vm2025_vm3, %v2006_v28, %v949_v35  ;;  %v947_v42 = vpop.permute.xlu0 %946  ;;  %v2012_v55 = vsel %vm1992_vm2, %v3373_v63, %v3697_v36  ;;  %v1427_v34 = vrot.slane %v3006_v11, 1  ;;  %v1428_v28 = vrot.slane %v3757_v16, 1  ;;  %v3087_v36 = vld [vmem:[%s3242_s22 + $0x60] sm:$0xff]   ;;  %v2801_v16 = vld [vmem:[%s3242_s22 + $0xbc] sm:$0x1] }
  0xc9   : > { %v3814_v41 = vsel %vm2025_vm3, %v2004_v52, %v947_v42  ;;  %v1294_v35 = vrot.slane %v1292_v26, 1  ;;  %v1753_v30 = vrot.slane %v1751_v27, 1  ;;  %v1756_v63 = vshll.u32 %v3819_v43, 16  ;;  %v3129_v52 = vld [vmem:[%s3242_s22 + $0x84] sm:$0xe] }
  0xca   : > { %v1621_v11 = vunpack.c.l.b16 %v2801_v16  ;;  %v1940_v16 = vrot.slane %v3819_v43, 1 }
  0xcb   : > { %v1295_v24 = vsel %vm614_vm0, %v3422_v17, %v1294_v35  ;;  %v1754_v42 = vor.u32 %v1753_v30, %v1749_v56  ;;  %v1799_v17 = vshll.u32 %v3823_v5, 16  ;;  %v1797_v35 = vshrl.u32 %v3823_v5, 16 }
  0xcc   : > { %1338 = vrot.lane.b32.xlu2 %v1247_v19, %s3188_s26  ;;  %v1429_v19 = vsel %vm887_vm1, %v1427_v34, %v1428_v28  ;;  %v3127_v34 = vor.u32 %v3126_v60, %v3125_v50 }
  0xcd   : > { %1968 = vrot.lane.b32.xlu1 %v1926_v59, %s3192_s30  ;;  %v1758_v59 = vrot.slane %v1756_v63, 1  ;;  %v1801_v56 = vrot.slane %v1799_v17, 1  ;;  %v3903_v17 = vld [vmem:[%s3242_s22 + $0x54] sm:$0xff]  }
  0xce   : > { %v1055_v1 = vpop.permute.xlu2 %1054  ;;  %1960 = vrot.lane.b32.xlu0 %v1914_v61, %s3192_s30  ;;  %v2729_v61 = vld [vmem:[%s3242_s22 + $0x50] sm:$0x1]  ;;  %v1951_v30 = vrot.slane %v3127_v34, 1  ;;  %v3910_v34 = vld [vmem:[%s3242_s22 + $0x24] sm:$0xff]  }
  0xcf   : > { %v3831_v33 = vsel %vm2058_vm4, %v2033_v8, %v1055_v1  ;;  %v955_v23 = vpop.permute.xlu1 %954  ;;  %v2010_v8 = vsel %vm1992_vm2, %v3087_v36, %v3583_v12  ;;  %v1759_v1 = vsel %vm614_vm0, %v1754_v42, %v1758_v59 }
  0xd0   : > { %v2045_v14 = vsel %vm2025_vm3, %v2012_v55, %v955_v23  ;;  %v953_v10 = vpop.permute.xlu0 %952  ;;  %v1637_v55 = vpack.c.b16 %v1621_v11, %v1621_v11  ;;  %v3130_v23 = vor.u32 %v3129_v52, %v3784_v20  ;;  %v3088_v11 = vld [vmem:[%s3242_s22 + $0xa8] sm:$0xff]  }
  0xd1   : > { %v3845_v0 = vsel %vm2025_vm3, %v2010_v8, %v953_v10  ;;  %v2993_v8 = vld [vmem:[%s3242_s22 + $0x18] sm:$0xe] }
  0xd2   : > { %v1952_v63 = vrot.slane %v1637_v55, 1  ;;  %v1804_v36 = vshll.u32 %v1637_v55, 16  ;;  %v1939_v20 = vrot.slane %v3130_v23, 1  ;;  %v2994_v59 = vor.u32 %v2993_v8, %v2992_v49  ;;  %v2789_v49 = vld [vmem:[%s3242_s22 + $0x2c] sm:$0x1] }
  0xd4   : > { %1474 = vrot.lane.b32.xlu2 %v1441_v39, %s3190_s28  ;;  %v1101_v39 = vunpack.c.l.b16 %v2729_v61  ;;  %v1953_v42 = vsel %vm887_vm1, %v1951_v30, %v1952_v63  ;;  %v1806_v43 = vrot.slane %v1804_v36, 1  ;;  %v3906_v61 = vld [vmem:[%s3242_s22 + $0x54] sm:$0xf0]  ;;  %v2998_v30 = vld [vmem:[%s3242_s22 + $0x48] sm:$0xf0] }
  0xd5   : > { %1466 = vrot.lane.b32.xlu1 %v1429_v19, %s3190_s28  ;;  %v2024_v19 = vsel %vm1992_vm2, %v3437_v48, %v3751_v32  ;;  %v2022_v48 = vsel %vm1992_vm2, %v3088_v11, %v3643_v13  ;;  %v2999_v63 = vld [vmem:[%s3242_s22 + $0x48] sm:$0xe]  ;;  %v3132_v36 = vld [vmem:[%s3242_s22 + $0x24] sm:$0xe] }
  0xd6   : > { %v1061_v12 = vpop.permute.xlu2 %1060  ;;  %1346 = vrot.lane.b32.xlu0 %v1295_v24, %s3188_s26  ;;  %v3884_v60 = vpack.c.b16 %v1101_v39, %v1101_v39  ;;  %v1802_v24 = vor.u32 %v1801_v56, %v1797_v35  ;;  %v2793_v35 = vld [vmem:[%s3242_s22 + $0x5c] sm:$0x1] }
  0xd7   : > { %v3854_v62 = vsel %vm2058_vm4, %v2039_v58, %v1061_v12  ;;  %v961_v26 = vpop.permute.xlu1 %960  ;;  %v2725_v58 = vld [vmem:[%s3242_s22 + $0x20] sm:$0x1]  ;;  %v1941_v12 = vsel %vm887_vm1, %v1939_v20, %v1940_v16  ;;  %v1613_v16 = vunpack.c.l.b16 %v2793_v35  ;;  %v1299_v35 = vshll.u32 %v3608_v47, 16 }
  0xd8   : > { %v3863_v27 = vsel %vm2025_vm3, %v2018_v44, %v961_v26  ;;  %v959_v46 = vpop.permute.xlu0 %958  ;;  %v1097_v50 = vunpack.c.l.b16 %v2725_v58  ;;  %v1196_v44 = vshll.u32 %v3884_v60, 16  ;;  %v1807_v13 = vsel %vm614_vm0, %v1802_v24, %v1806_v43  ;;  %v3131_v58 = vld [vmem:[%s3242_s22 + $0x24] sm:$0xf0] }
  0xd9   : > { %v3871_v28 = vsel %vm2025_vm3, %v2016_v7, %v959_v46  ;;  %v3942_v43 = vpack.c.b16 %v1613_v16, %v1613_v16 }
  0xda   : > { %v1113_v52 = vpack.c.b16 %v1097_v50, %v1097_v50  ;;  %v1198_v46 = vrot.slane %v1196_v44, 1 }
  0xdc   : > { %1850 = vrot.lane.b32.xlu2 %v1759_v1, %s3191_s29  ;;  %v1148_v26 = vshll.u32 %v1113_v52, 16  ;;  %v1403_v1 = vrot.slane %v2994_v59, 1  ;;  %v1404_v55 = vrot.slane %v1113_v52, 1  ;;  %v1199_v20 = vsel %vm614_vm0, %v3333_v9, %v1198_v46  ;;  %v2738_v52 = vld [vmem:[%s3242_s22 + $0xbc] sm:$0x1] }
  0xdd   : > { %1586 = vrot.lane.b32.xlu1 %v3823_v5, %s3189_s27  ;;  %v1655_v59 = vshll.u32 %v3910_v34, 16  ;;  %v1110_v44 = vunpack.c.l.b16 %v2738_v52  ;;  %v1301_v52 = vrot.slane %v1299_v35, 1  ;;  %v2798_v35 = vld [vmem:[%s3242_s22 + $0x98] sm:$0x1] }
  0xde   : > { %v1067_v21 = vpop.permute.xlu2 %1066  ;;  %1578 = vrot.lane.b32.xlu0 %v3781_v57, %s3189_s27  ;;  %v1150_v39 = vrot.slane %v1148_v26, 1  ;;  %v1405_v50 = vsel %vm887_vm1, %v1403_v1, %v1404_v55 }
  0xdf   : > { %v3881_v10 = vsel %vm2058_vm4, %v2045_v14, %v1067_v21  ;;  %v967_v5 = vpop.permute.xlu1 %966 }
  0xe0   : > { %v2057_v14 = vsel %vm2025_vm3, %v2024_v19, %v967_v5  ;;  %v965_v32 = vpop.permute.xlu0 %964  ;;  %v1151_v19 = vsel %vm614_vm0, %v3280_v31, %v1150_v39  ;;  %v1609_v5 = vunpack.c.l.b16 %v2789_v49  ;;  %v2734_v31 = vld [vmem:[%s3242_s22 + $0x8c] sm:$0x1]  ;;  %v1657_v39 = vrot.slane %v1655_v59, 1 }
  0xe1   : > { %v3897_v57 = vsel %vm2025_vm3, %v2022_v48, %v965_v32  ;;  %v3133_v48 = vor.u32 %v3132_v36, %v3131_v58  ;;  %v1708_v58 = vshll.u32 %v3942_v43, 16  ;;  %v1106_v46 = vunpack.c.l.b16 %v2734_v31 }
  0xe2   : > { %v1251_v36 = vshll.u32 %v3594_v25, 16 }
  0xe3   : > { %v1710_v49 = vrot.slane %v1708_v58, 1 }
  0xe4   : > { %1986 = vrot.lane.b32.xlu2 %v1953_v42, %s3192_s30  ;;  %v1253_v59 = vrot.slane %v1251_v36, 1 }
  0xe5   : > { %1978 = vrot.lane.b32.xlu1 %v1941_v12, %s3192_s30  ;;  %v1416_v12 = vrot.slane %v3884_v60, 1  ;;  %v1653_v60 = vshrl.u32 %v3910_v34, 16 }
  0xe6   : > { %v3914_v7 = vpop.permute.xlu2 %1072  ;;  %1858 = vrot.lane.b32.xlu0 %v1807_v13, %s3191_s29  ;;  %v1701_v13 = vshrl.u32 %v3903_v17, 16 }
  0xe7   : > { %v1053_v23 = vpop.permute.xlu1 %1052 }
  0xe8   : > { %v3920_v56 = vsel %vm2058_vm4, %v3787_v2, %v1053_v23  ;;  %v1051_v21 = vpop.permute.xlu0 %1050  ;;  %v3000_v2 = vor.u32 %v2999_v63, %v2998_v30  ;;  %v3963_v63 = vpack.c.b16 %v1110_v44, %v1110_v44 }
  0xe9   : > { %v3929_v8 = vsel %vm2058_vm4, %v3677_v37, %v1051_v21  ;;  %v1703_v37 = vshll.u32 %v3903_v17, 16 }
  0xea   : > { %v1415_v11 = vrot.slane %v3000_v2, 1 }
  0xeb   : > { %v1705_v55 = vrot.slane %v1703_v37, 1 }
  0xec   : > { %1450 = vrot.lane.b32.xlu2 %v1405_v50, %s3190_s28  ;;  %v1417_v50 = vsel %vm887_vm1, %v1415_v11, %v1416_v12  ;;  %v3138_v12 = vld [vmem:[%s3242_s22 + $0xb4] sm:$0xe] }
  0xed   : > { %1330 = vrot.lane.b32.xlu1 %v1199_v20, %s3188_s26  ;;  %v3971_v20 = vpack.c.b16 %v1106_v46, %v1106_v46  ;;  %v2802_v46 = vld [vmem:[%s3242_s22 + $0xc8] sm:$0x1] }
  0xee   : > { %v1079_v24 = vpop.permute.xlu2 %1078  ;;  %1322 = vrot.lane.b32.xlu0 %v1151_v19, %s3188_s26  ;;  %v1658_v19 = vor.u32 %v1657_v39, %v1653_v60  ;;  %v1928_v39 = vrot.slane %v3942_v43, 1 }
  0xef   : > { %v3939_v42 = vsel %vm2058_vm4, %v2057_v14, %v1079_v24  ;;  %v1059_v9 = vpop.permute.xlu1 %1058  ;;  %v1625_v14 = vpack.c.b16 %v1609_v5, %v1609_v5  ;;  %v1297_v24 = vshrl.u32 %v3608_v47, 16  ;;  %v1256_v31 = vshll.u32 %v3971_v20, 16 }
  0xf0   : > { %v3949_v32 = vsel %vm2058_vm4, %v3814_v41, %v1059_v9  ;;  %v1057_v26 = vpop.permute.xlu0 %1056  ;;  %v1915_v41 = vrot.slane %v3133_v48, 1  ;;  %v1249_v9 = vshrl.u32 %v3594_v25, 16 }
  0xf1   : > { %v3955_v1 = vsel %vm2058_vm4, %v3688_v22, %v1057_v26  ;;  %v1916_v23 = vrot.slane %v1625_v14, 1  ;;  %v1660_v30 = vshll.u32 %v1625_v14, 16  ;;  %v3135_v22 = vld [vmem:[%s3242_s22 + $0x54] sm:$0xe]  ;;  %v2260_v14 = vld [vmem:[%s4504_s1 + $0x10] sm:$0x3]  ;;  %v1302_v44 = vor.u32 %v1301_v52, %v1297_v24 }
  0xf2   : > { %v3136_v47 = vor.u32 %v3135_v22, %v3906_v61  ;;  %v1254_v58 = vor.u32 %v1253_v59, %v1249_v9  ;;  %v1622_v22 = vunpack.c.l.b16 %v2802_v46  ;;  %v2965_v24 = vld [vmem:[%s3242_s22 + $0x90] sm:$0xff]  }
  0xf3   : > { %v1917_v2 = vsel %vm887_vm1, %v1915_v41, %v1916_v23  ;;  %v1662_v5 = vrot.slane %v1660_v30, 1  ;;  %v1258_v41 = vrot.slane %v1256_v31, 1  ;;  %v1763_v9 = vshll.u32 %v2965_v24, 16 }
  0xf4   : > { %1570 = vrot.lane.b32.xlu2 %v3903_v17, %s3189_s27  ;;  %v1706_v17 = vor.u32 %v1705_v55, %v1701_v13  ;;  %v2270_v13 = vunpack.c.l.b16 %v2260_v14  ;;  %v1927_v60 = vrot.slane %v3136_v47, 1  ;;  %v1309_v47 = vshrl.u32 %v3630_v6, 16 }
  0xf5   : > { %1562 = vrot.lane.b32.xlu1 %v3910_v34, %s3189_s27  ;;  %v1304_v34 = vshll.u32 %v3963_v63, 16  ;;  %v1663_v25 = vsel %vm614_vm0, %v1658_v19, %v1662_v5  ;;  %v1259_v43 = vsel %vm614_vm0, %v1254_v58, %v1258_v41  ;;  %v1618_v19 = vunpack.c.l.b16 %v2798_v35 }
  0xf6   : > { %v3969_v21 = vpop.permute.xlu2 %1344  ;;  %1458 = vrot.lane.b32.xlu0 %v1417_v50, %s3190_s28  ;;  %v1711_v48 = vsel %vm614_vm0, %v1706_v17, %v1710_v49  ;;  %v2273_v61 = vpack.c.b16 %v2270_v13, %v2270_v13  ;;  %v1311_v5 = vshll.u32 %v3630_v6, 16  ;;  %v1761_v58 = vshrl.u32 %v2965_v24, 16 }
  0xf7   : > { %v3974_v16 = vpop.permute.xlu1 %1064  ;;  %v1306_v26 = vrot.slane %v1304_v34, 1  ;;  %v4020_v34 = vpack.c.b16 %v1622_v22, %v1622_v22  ;;  %v4027_v31 = vpack.c.b16 %v1618_v19, %v1618_v19  ;;  %v1765_v41 = vrot.slane %v1763_v9, 1  ;;  %v3144_v9 = vld [vmem:[%s3242_s22 + $0x54] sm:$0xe] }
  0xf8   : > { %v1063_v37 = vpop.permute.xlu0 %1062  ;;  %v2311_v36 = vsel %vm2309_vm5, %v2273_v61, 0 }
  0xf9   : > { %v3982_v11 = vsel %vm2058_vm4, %v3711_v4, %v1063_v37  ;;  %v3141_v4 = vld [vmem:[%s3242_s22 + $0x84] sm:$0xe]  ;;  %v1307_v30 = vsel %vm614_vm0, %v1302_v44, %v1306_v26  ;;  %3041 = vmatpush.bf16.msra.mxu2 %v2311_v36  ;;  %3042 = vmatpush.bf16.msra.mxu3 %v2311_v36  ;;  %v2726_v37 = vld [vmem:[%s3242_s22 + $0x2c] sm:$0x1]  ;;  %v1816_v26 = vshll.u32 %v4020_v34, 16 }
  0xfa   : > { %2318 = vmatpush.bf16.msra.mxu0 %v2311_v36  ;;  %3040 = vmatpush.bf16.msra.mxu1 %v2311_v36  ;;  %v3142_v52 = vor.u32 %v3141_v4, %v3597_v45  ;;  %v2847_v45 = vld [vmem:[%s4504_s1] sm:$0xff]  ;;  %v1098_v4 = vunpack.c.l.b16 %v2726_v37  ;;  %v2730_v37 = vld [vmem:[%s3242_s22 + $0x5c] sm:$0x1] }
  0xfc   : > { %1962 = vrot.lane.b32.xlu2 %v1917_v2, %s3192_s30  ;;  %v3139_v2 = vor.u32 %v3138_v12, %v3611_v54  ;;  %v1313_v12 = vrot.slane %v1311_v5, 1 }
  0xfd   : > { %1842 = vrot.lane.b32.xlu1 %v1711_v48, %s3191_s29  ;;  %v1443_v48 = vrot.slane %v3963_v63, 1  ;;  %v1431_v63 = vrot.slane %v3971_v20, 1 }
  0xfe   : > { %v3995_v55 = vpop.permute.xlu2 %1576  ;;  %1834 = vrot.lane.b32.xlu0 %v1663_v25, %s3191_s29  ;;  %v1442_v59 = vrot.slane %v3139_v2, 1  ;;  %v1430_v25 = vrot.slane %v3142_v52, 1  ;;  %v4048_v20 = vor.u32 %v1313_v12, %v1309_v47  ;;  %v3031_v2 = vld [vmem:[%s3242_s22 + $0x90] sm:$0xf0]  ;;  %v3032_v52 = vld [vmem:[%s3242_s22 + $0x90] sm:$0xe] }
  0xff   : > { %v1071_v23 = vpop.permute.xlu1 %1070  ;;  %v3147_v47 = vld [vmem:[%s3242_s22 + $0x24] sm:$0xe] }
 0x100   : > { %v4003_v50 = vsel %vm2058_vm4, %v3871_v28, %v1071_v23  ;;  %v1069_v17 = vpop.permute.xlu0 %1068  ;;  %v2848_v28 = vld [vmem:[%s4504_s1 + $0x8] sm:$0xff]  ;;  %v1444_v61 = vsel %vm887_vm1, %v1442_v59, %v1443_v48  ;;  %v1768_v23 = vshll.u32 %v4027_v31, 16 }
 0x101   : > { %v4008_v49 = vsel %vm2058_vm4, %v3738_v40, %v1069_v17  ;;  %v1929_v40 = vsel %vm887_vm1, %v1927_v60, %v1928_v39  ;;  %3044 = vmatpush.bf16.msra.mxu2 %v2848_v28  ;;  %3045 = vmatpush.bf16.msra.mxu3 %v2848_v28  ;;  %v1818_v60 = vrot.slane %v1816_v26, 1  ;;  %v4051_v39 = vpack.c.b16 %v1098_v4, %v1098_v4  ;;  %v3037_v17 = vld [vmem:[%s3242_s22 + $0xc0] sm:$0xf0] }
 0x102   : > { %2319 = vmatpush.bf16.msra.mxu0 %v2848_v28  ;;  %3043 = vmatpush.bf16.msra.mxu1 %v2848_v28  ;;  %v1770_v22 = vrot.slane %v1768_v23, 1  ;;  %v1153_v28 = vshrl.u32 %v3545_v29, 16  ;;  %v1955_v4 = vrot.slane %v4020_v34, 1  ;;  %v1203_v23 = vshll.u32 %v3556_v3, 16 }
 0x103   : > { %v1819_v19 = vsel %vm614_vm0, %v4048_v20, %v1818_v60  ;;  %v3145_v60 = vor.u32 %v3144_v9, %v3559_v38 }
 0x104   : > { %1348 = vrot.lane.b32.xlu2 %v1307_v30, %s3188_s26  ;;  %v1766_v30 = vor.u32 %v1765_v41, %v1761_v58  ;;  %v1943_v41 = vrot.slane %v4027_v31, 1  ;;  %v1205_v38 = vrot.slane %v1203_v23, 1  ;;  %v3025_v23 = vld [vmem:[%s3242_s22 + $0x60] sm:$0xf0] }
 0x105   : > { %1340 = vrot.lane.b32.xlu1 %v1259_v43, %s3188_s26  ;;  %3047 = vmatpush.bf16.msra.mxu2 %v2847_v45  ;;  %v3038_v43 = vld [vmem:[%s3242_s22 + $0xc0] sm:$0xe] }
 0x106   : > { %v4023_v54 = vpop.permute.xlu2 %1856  ;;  %1970 = vrot.lane.b32.xlu0 %v1929_v40, %s3192_s30  ;;  %3048 = vmatpush.bf16.msra.mxu3 %v2847_v45  ;;  %v1771_v59 = vsel %vm614_vm0, %v1766_v30, %v1770_v22  ;;  %v3039_v48 = vor.u32 %v3038_v43, %v3037_v17  ;;  %v4086_v30 = vld [vmem:[%s3242_s22 + $0x30] sm:$0xff]   ;;  %v3148_v17 = vor.u32 %v3147_v47, %v3548_v51 }
 0x107   : > { %v1077_v14 = vpop.permute.xlu1 %1076  ;;  %2320 = vmatpush.bf16.msra.mxu0 %v2847_v45  ;;  %3046 = vmatpush.bf16.msra.mxu1 %v2847_v45  ;;  %v3033_v45 = vor.u32 %v3032_v52, %v3031_v2  ;;  %v1667_v2 = vshll.u32 %v4086_v30, 16  ;;  %v1407_v52 = vrot.slane %v4051_v39, 1  ;;  %v1665_v9 = vshrl.u32 %v4086_v30, 16 }
 0x108   : > { %v4036_v44 = vsel %vm2058_vm4, %v3897_v57, %v1077_v14  ;;  %v1075_v13 = vpop.permute.xlu0 %1074  ;;  %v1155_v57 = vshll.u32 %v3545_v29, 16  ;;  %v2790_v29 = vld [vmem:[%s3242_s22 + $0x38] sm:$0x1]  ;;  %v1954_v26 = vrot.slane %v3039_v48, 1  ;;  %v1406_v51 = vrot.slane %v3148_v17, 1 }
 0x109   : > { %v4042_v46 = vsel %vm2058_vm4, %v3763_v15, %v1075_v13  ;;  %v1432_v15 = vsel %vm887_vm1, %v1430_v25, %v1431_v63  ;;  %v1102_v25 = vunpack.c.l.b16 %v2730_v37  ;;  %v1942_v58 = vrot.slane %v3033_v45, 1  ;;  %v3019_v17 = vld [vmem:[%s3242_s22 + $0x30] sm:$0xf0] }
 0x10a   : > { %v1157_v5 = vrot.slane %v1155_v57, 1  ;;  %v1956_v34 = vsel %vm887_vm1, %v1954_v26, %v1955_v4  ;;  %v1408_v26 = vsel %vm887_vm1, %v1406_v51, %v1407_v52 }
 0x10c   : > { %1580 = vrot.lane.b32.xlu2 %v2965_v24, %s3189_s27  ;;  %v1160_v24 = vshll.u32 %v4051_v39, 16  ;;  %v1158_v12 = vor.u32 %v1157_v5, %v1153_v28  ;;  %v1201_v28 = vshrl.u32 %v3556_v3, 16 }
 0x10d   : > { %1476 = vrot.lane.b32.xlu1 %v1444_v61, %s3190_s28  ;;  %v1610_v61 = vunpack.c.l.b16 %v2790_v29  ;;  %v2076_v29 = vsel %vm2058_vm4, %v3845_v0, %v3974_v16 }
 0x10e   : > { %v4054_v35 = vpop.permute.xlu2 %1328  ;;  %1468 = vrot.lane.b32.xlu0 %v1432_v15, %s3190_s28  ;;  %v1162_v14 = vrot.slane %v1160_v24, 1  ;;  %v1118_v15 = vpack.c.b16 %v1102_v25, %v1102_v25  ;;  %v1206_v45 = vor.u32 %v1205_v38, %v1201_v28 }
 0x10f   : > { %v4057_v36 = vpop.permute.xlu1 %1336  ;;  %v4092_v43 = vpack.c.b16 %v1610_v61, %v1610_v61 }
 0x110   : > { %v4067_v40 = vpop.permute.xlu0 %1320  ;;  %v1163_v57 = vsel %vm614_vm0, %v1158_v12, %v1162_v14  ;;  %v1419_v31 = vrot.slane %v1118_v15, 1  ;;  %v1208_v5 = vshll.u32 %v1118_v15, 16  ;;  %v2084_v12 = vsel %vm2058_vm4, %v3863_v27, %v3914_v7  ;;  %v2794_v14 = vld [vmem:[%s3242_s22 + $0x68] sm:$0x1] }
 0x111   : > { %v1672_v48 = vshll.u32 %v4092_v43, 16  ;;  %v2117_v25 = vsel %vm2091_vm6, %v2084_v12, %v3969_v21  ;;  %v2109_v21 = vsel %vm2091_vm6, %v2076_v29, %v4057_v36  ;;  %v1614_v16 = vunpack.c.l.b16 %v2794_v14  ;;  %v3007_v12 = vld [vmem:[%s3242_s22 + $0x90] sm:$0xf0] }
 0x112   : > { %v1210_v47 = vrot.slane %v1208_v5, 1 }
 0x113   : > { %v1674_v7 = vrot.slane %v1672_v48, 1 }
 0x114   : > { %1860 = vrot.lane.b32.xlu2 %v1819_v19, %s3191_s29  ;;  %v1418_v19 = vrot.slane %v3145_v60, 1  ;;  %v1211_v0 = vsel %vm614_vm0, %v1206_v45, %v1210_v47 }
 0x115   : > { %1852 = vrot.lane.b32.xlu1 %v1771_v59, %s3191_s29  ;;  %v1669_v59 = vrot.slane %v1667_v2, 1 }
 0x116   : > { %v4076_v63 = vpop.permute.xlu2 %1560  ;;  %1588 = vrot.lane.b32.xlu0 %v3630_v6, %s3189_s27  ;;  %v1944_v6 = vsel %vm887_vm1, %v1942_v58, %v1943_v41  ;;  %v1420_v3 = vsel %vm887_vm1, %v1418_v19, %v1419_v31  ;;  %v2963_v58 = vld [vmem:[%s3242_s22 + $0x60] sm:$0xff]   ;;  %v1630_v19 = vpack.c.b16 %v1614_v16, %v1614_v16  ;;  %v4158_v16 = vld [vmem:[%s3242_s22 + $0xcc] sm:$0xff]  }
 0x117   : > { %v1473_v13 = vpop.permute.xlu1 %1472  ;;  %v1670_v27 = vor.u32 %v1669_v59, %v1665_v9  ;;  %v1715_v36 = vshll.u32 %v2963_v58, 16 }
 0x118   : > { %v1465_v22 = vpop.permute.xlu0 %1464  ;;  %v2150_v4 = vsel %vm2124_vm7, %v2117_v25, %v1473_v13  ;;  %v1720_v45 = vshll.u32 %v1630_v19, 16  ;;  %v1919_v25 = vrot.slane %v4092_v43, 1 }
 0x119   : > { %v2142_v61 = vsel %vm2124_vm7, %v2109_v21, %v1465_v22  ;;  %v3020_v22 = vld [vmem:[%s3242_s22 + $0x30] sm:$0xe]  ;;  %v1717_v59 = vrot.slane %v1715_v36, 1 }
 0x11a   : > { %v2175_v31 = vsel %vm2157_vm8, %v2142_v61, %v3995_v55  ;;  %v3021_v52 = vor.u32 %v3020_v22, %v3019_v17  ;;  %v1713_v55 = vshrl.u32 %v2963_v58, 16 }
 0x11c   : > { %1324 = vrot.lane.b32.xlu2 %v1163_v57, %s3188_s26  ;;  %v3026_v57 = vld [vmem:[%s3242_s22 + $0x60] sm:$0xe]  ;;  %v1918_v14 = vrot.slane %v3021_v52, 1 }
 0x11d   : > { %1988 = vrot.lane.b32.xlu1 %v1956_v34, %s3192_s30  ;;  %v1675_v34 = vsel %vm614_vm0, %v1670_v27, %v1674_v7  ;;  %v3027_v28 = vor.u32 %v3026_v57, %v3025_v23  ;;  %v1722_v7 = vrot.slane %v1720_v45, 1 }
 0x11e   : > { %v4097_v24 = vpop.permute.xlu2 %1840  ;;  %1980 = vrot.lane.b32.xlu0 %v1944_v6, %s3192_s30  ;;  %v2739_v6 = vld [vmem:[%s3242_s22 + $0xc8] sm:$0x1] }
 0x11f   : > { %v1849_v37 = vpop.permute.xlu1 %1848  ;;  %v1111_v9 = vunpack.c.l.b16 %v2739_v6  ;;  %v1930_v48 = vrot.slane %v3027_v28, 1  ;;  %v3013_v6 = vld [vmem:[%s3242_s22 + $0xc0] sm:$0xf0] }
 0x120   : > { %v1585_v39 = vpop.permute.xlu0 %1584  ;;  %v2208_v38 = vsel %vm2190_vm9, %v2175_v31, %v1849_v37  ;;  %v3014_v31 = vld [vmem:[%s3242_s22 + $0xc0] sm:$0xe] }
 0x121   : > { %v2183_v41 = vsel %vm2157_vm8, %v2150_v4, %v1585_v39  ;;  %v3008_v39 = vld [vmem:[%s3242_s22 + $0x90] sm:$0xe]  ;;  %v4149_v29 = vpack.c.b16 %v1111_v9, %v1111_v9  ;;  %v3015_v9 = vor.u32 %v3014_v31, %v3013_v6  ;;  %v3153_v31 = vld [vmem:[%s3242_s22 + $0xcc] sm:$0xe] }
 0x122   : > { %v2216_v60 = vsel %vm2190_vm9, %v2183_v41, %v4023_v54  ;;  %v2735_v54 = vld [vmem:[%s3242_s22 + $0x98] sm:$0x1]  ;;  %v3009_v21 = vor.u32 %v3008_v39, %v3007_v12  ;;  %v1823_v12 = vshll.u32 %v4158_v16, 16 }
 0x123   : > { %v1107_v37 = vunpack.c.l.b16 %v2735_v54  ;;  %v1316_v43 = vshll.u32 %v4149_v29, 16  ;;  %v1445_v39 = vrot.slane %v3015_v9, 1 }
 0x124   : > { %1460 = vrot.lane.b32.xlu2 %v1420_v3, %s3190_s28  ;;  %v1931_v3 = vrot.slane %v1630_v19, 1  ;;  %v1433_v23 = vrot.slane %v3009_v21, 1 }
 0x125   : > { %1452 = vrot.lane.b32.xlu1 %v1408_v26, %s3190_s28  ;;  %v1718_v26 = vor.u32 %v1717_v59, %v1713_v55  ;;  %v1318_v17 = vrot.slane %v1316_v43, 1 }
 0x126   : > { %v4123_v13 = vpop.permute.xlu2 %1338  ;;  %1332 = vrot.lane.b32.xlu0 %v1211_v0, %s3188_s26  ;;  %v1932_v27 = vsel %vm887_vm1, %v1930_v48, %v1931_v3  ;;  %v1920_v0 = vsel %vm887_vm1, %v1918_v14, %v1919_v25  ;;  %v2093_v3 = vsel %vm2091_vm6, %v3799_v53, %v4067_v40  ;;  %v1446_v25 = vrot.slane %v4149_v29, 1 }
 0x127   : > { %v1985_v15 = vpop.permute.xlu1 %1984  ;;  %v1723_v61 = vsel %vm614_vm0, %v1718_v26, %v1722_v7  ;;  %v1319_v52 = vsel %vm614_vm0, %v4048_v20, %v1318_v17  ;;  %v2731_v20 = vld [vmem:[%s3242_s22 + $0x68] sm:$0x1]  ;;  %v1825_v29 = vrot.slane %v1823_v12, 1 }
 0x128   : > { %v2249_v2 = vsel %vm2223_vm10, %v2216_v60, %v1985_v15  ;;  %v1977_v5 = vpop.permute.xlu0 %1976  ;;  %v4165_v15 = vld [vmem:[%s3242_s22 + $0x9c] sm:$0xff]   ;;  %v1103_v21 = vunpack.c.l.b16 %v2731_v20 }
 0x129   : > { %2840 = vmatmul.msk.bf16.vlgmr.msra.gmra.mxu3 %vm2276_vm11, %v2249_v2  ;;  %v2241_v51 = vsel %vm2223_vm10, %v2208_v38, %v1977_v5  ;;  %v3149_v60 = vld [vmem:[%s3242_s22 + $0x9c] sm:$0xf0]  ;;  %v2803_v2 = vld [vmem:[%s3242_s22 + $0xd4] sm:$0x1]  ;;  %v2799_v38 = vld [vmem:[%s3242_s22 + $0xa4] sm:$0x1]  ;;  %v2101_v5 = vsel %vm2091_vm6, %v3955_v1, %v4054_v35 }
 0x12a   : > { %2836 = vmatmul.msk.bf16.vlgmr.msra.gmra.mxu2 %vm2276_vm11, %v2241_v51  ;;  %v3150_v51 = vld [vmem:[%s3242_s22 + $0x9c] sm:$0xe]  ;;  %v1623_v55 = vunpack.c.l.b16 %v2803_v2  ;;  %v1619_v48 = vunpack.c.l.b16 %v2799_v38  ;;  %v4218_v6 = vpack.c.b16 %v1103_v21, %v1103_v21  ;;  %v3002_v20 = vld [vmem:[%s3242_s22 + $0x60] sm:$0xe]  ;;  %v2996_v21 = vld [vmem:[%s3242_s22 + $0x30] sm:$0xe] }
 0x12c   : > { %1836 = vrot.lane.b32.xlu2 %v1675_v34, %s3191_s29  ;;  %v4197_v14 = vpack.c.b16 %v1623_v55, %v1623_v55  ;;  %v1635_v26 = vpack.c.b16 %v1619_v48, %v1619_v48  ;;  %v4237_v48 = vld [vmem:[%s3242_s22 + $0x3c] sm:$0xf0] }
 0x12d   : > { %1572 = vrot.lane.b32.xlu1 %v2963_v58, %s3189_s27  ;;  %v1123_v58 = vpack.c.b16 %v1107_v37, %v1107_v37 }
 0x12e   : > { %v4144_v47 = vpop.permute.xlu2 %1474  ;;  %1564 = vrot.lane.b32.xlu0 %v4086_v30, %s3189_s27  ;;  %v4161_v30 = vld [vmem:[%s3242_s22 + $0xcc] sm:$0xf0]  ;;  %v1946_v17 = vrot.slane %v1635_v26, 1 }
 0x12f   : > { %v1457_v4 = vpop.permute.xlu1 %1456  ;;  %v1434_v57 = vrot.slane %v1123_v58, 1  ;;  %v1268_v36 = vshll.u32 %v1123_v58, 16  ;;  %v3151_v58 = vor.u32 %v3150_v51, %v3149_v60 }
 0x130   : > { %v1449_v41 = vpop.permute.xlu0 %1448  ;;  %v2134_v59 = vsel %vm2124_vm7, %v2101_v5, %v1457_v4  ;;  %v2727_v4 = vld [vmem:[%s3242_s22 + $0x38] sm:$0x1] }
 0x131   : > { %v1435_v19 = vsel %vm887_vm1, %v1433_v23, %v1434_v57  ;;  %v1270_v28 = vrot.slane %v1268_v36, 1  ;;  %v2126_v35 = vsel %vm2124_vm7, %v2093_v3, %v1449_v41  ;;  %v1099_v23 = vunpack.c.l.b16 %v2727_v4 }
 0x132   : > { %v1773_v57 = vshrl.u32 %v4165_v15, 16  ;;  %v1945_v60 = vrot.slane %v3151_v58, 1  ;;  %v2995_v58 = vld [vmem:[%s3242_s22 + $0x30] sm:$0xf0] }
 0x133   : > { %v1271_v1 = vsel %vm614_vm0, %v3450_v18, %v1270_v28  ;;  %v1775_v18 = vshll.u32 %v4165_v15, 16  ;;  %v4223_v28 = vpack.c.b16 %v1099_v23, %v1099_v23 }
 0x134   : > { %1972 = vrot.lane.b32.xlu2 %v1932_v27, %s3192_s30  ;;  %v2159_v27 = vsel %vm2157_vm8, %v2126_v35, %v4076_v63  ;;  %v1447_v63 = vsel %vm887_vm1, %v1445_v39, %v1446_v25  ;;  %v3001_v35 = vld [vmem:[%s3242_s22 + $0x60] sm:$0xf0]  ;;  %v4245_v39 = vld [vmem:[%s3242_s22 + $0x6c] sm:$0xff]  }
 0x135   : > { %1964 = vrot.lane.b32.xlu1 %v1920_v0, %s3192_s30  ;;  %v1777_v36 = vrot.slane %v1775_v18, 1  ;;  %v1172_v55 = vshll.u32 %v4223_v28, 16  ;;  %v2791_v18 = vld [vmem:[%s3242_s22 + $0x44] sm:$0x1]  ;;  %v4512_v25 = vld [vmem:[#allocation3_spill] sm:$0xff] }
 0x136   : > { %v4169_v34 = vpop.permute.xlu2 %1850  ;;  %1844 = vrot.lane.b32.xlu0 %v1723_v61, %s3191_s29  ;;  %v1828_v61 = vshll.u32 %v4197_v14, 16 }
 0x137   : > { %v1833_v22 = vpop.permute.xlu1 %1832  ;;  %v1778_v38 = vor.u32 %v1777_v36, %v1773_v57  ;;  %v1174_v12 = vrot.slane %v1172_v55, 1  ;;  %v2997_v36 = vor.u32 %v2996_v21, %v2995_v58 }
 0x138   : > { %v1569_v54 = vpop.permute.xlu0 %1568  ;;  %v2192_v41 = vsel %vm2190_vm9, %v2159_v27, %v1833_v22  ;;  %v1780_v22 = vshll.u32 %v1635_v26, 16  ;;  %v3003_v27 = vor.u32 %v3002_v20, %v3001_v35 }
 0x139   : > { %v2167_v45 = vsel %vm2157_vm8, %v2134_v59, %v1569_v54  ;;  %v1947_v54 = vsel %vm887_vm1, %v1945_v60, %v1946_v17  ;;  %v4234_v59 = vld [vmem:[%s3242_s22 + $0x3c] sm:$0xff]  }
 0x13a   : > { %v2200_v40 = vsel %vm2190_vm9, %v2167_v45, %v4097_v24  ;;  %v1821_v24 = vshrl.u32 %v4158_v16, 16  ;;  %v1782_v51 = vrot.slane %v1780_v22, 1  ;;  %v1421_v57 = vrot.slane %v3003_v27, 1 }
 0x13b   : > { %v1679_v22 = vshll.u32 %v4234_v59, 16 }
 0x13c   : > { %1470 = vrot.lane.b32.xlu2 %v1435_v19, %s3190_s28  ;;  %v1826_v2 = vor.u32 %v1825_v29, %v1821_v24  ;;  %v1830_v19 = vrot.slane %v1828_v61, 1  ;;  %v1783_v3 = vsel %vm614_vm0, %v1778_v38, %v1782_v51  ;;  %v4513_v24 = vld [vmem:[#allocation2_spill] sm:$0xff]  ;;  %v1611_v29 = vunpack.c.l.b16 %v2791_v18  ;;  %v2795_v61 = vld [vmem:[%s3242_s22 + $0x74] sm:$0x1] }
 0x13d   : > { %1350 = vrot.lane.b32.xlu1 %v1319_v52, %s3188_s26  ;;  %v1615_v60 = vunpack.c.l.b16 %v2795_v61  ;;  %v1409_v38 = vrot.slane %v2997_v36, 1  ;;  %v1681_v55 = vrot.slane %v1679_v22, 1 }
 0x13e   : > { %v4194_v37 = vpop.permute.xlu2 %1986  ;;  %1342 = vrot.lane.b32.xlu0 %v1271_v1, %s3188_s26  ;;  %v1831_v9 = vsel %vm614_vm0, %v1826_v2, %v1830_v19  ;;  %v3154_v1 = vor.u32 %v3153_v31, %v4161_v30  ;;  %v1958_v30 = vrot.slane %v4197_v14, 1  ;;  %v1627_v17 = vpack.c.b16 %v1611_v29, %v1611_v29 }
 0x13f   : > { %v1969_v53 = vpop.permute.xlu1 %1968  ;;  %v1727_v19 = vshll.u32 %v4245_v39, 16 }
 0x140   : > { %v2233_v7 = vsel %vm2223_vm10, %v2200_v40, %v1969_v53  ;;  %v1961_v0 = vpop.permute.xlu0 %1960  ;;  %v4248_v53 = vld [vmem:[%s3242_s22 + $0x6c] sm:$0xf0]  ;;  %v1957_v4 = vrot.slane %v3154_v1, 1  ;;  %v1922_v61 = vrot.slane %v1627_v17, 1 }
 0x141   : > { %2832 = vmatmul.msk.bf16.vlgmr.msra.gmra.mxu1 %vm2276_vm11, %v2233_v7  ;;  %v2225_v43 = vsel %vm2223_vm10, %v2192_v41, %v1961_v0  ;;  %v2111_v41 = vsel %vm2091_vm6, %v3881_v10, %v4123_v13  ;;  %v1422_v13 = vrot.slane %v4218_v6, 1  ;;  %v1729_v1 = vrot.slane %v1727_v19, 1 }
 0x142   : > { %2828 = vmatmul.msk.bf16.vlgmr.msra.gmra.mxu0 %vm2276_vm11, %v2225_v43  ;;  %v1175_v43 = vsel %vm614_vm0, %v4513_v24, %v1174_v12 }
 0x144   : > { %1590 = vrot.lane.b32.xlu2 %v4158_v16, %s3189_s27 }
 0x145   : > { %1582 = vrot.lane.b32.xlu1 %v4165_v15, %s3189_s27  ;;  %v1220_v15 = vshll.u32 %v4218_v6, 16  ;;  %v1410_v6 = vrot.slane %v4223_v28, 1  ;;  %v1725_v28 = vshrl.u32 %v4245_v39, 16 }
 0x146   : > { %1478 = vrot.lane.b32.xlu0 %v1447_v63, %s3190_s28  ;;  %v4226_v5 = vpop.permute.xlu2 %1450  ;;  %v1959_v63 = vsel %vm887_vm1, %v1957_v4, %v1958_v30 }
 0x147   : > { %v1467_v16 = vpop.permute.xlu1 %1466  ;;  %v1222_v45 = vrot.slane %v1220_v15, 1  ;;  %v1423_v15 = vsel %vm887_vm1, %v1421_v57, %v1422_v13  ;;  %v1411_v12 = vsel %vm887_vm1, %v1409_v38, %v1410_v6  ;;  %v1730_v18 = vor.u32 %v1729_v1, %v1725_v28 }
 0x148   : > { %v1347_v52 = vpop.permute.xlu0 %1346  ;;  %v2144_v23 = vsel %vm2124_vm7, %v2111_v41, %v1467_v16 }
 0x149   : > { %v1223_v26 = vsel %vm614_vm0, %v4512_v25, %v1222_v45  ;;  %v2119_v10 = vsel %vm2091_vm6, %v4042_v46, %v1347_v52  ;;  %v3156_v45 = vld [vmem:[%s3242_s22 + $0x6c] sm:$0xe] }
 0x14a   : > { %v2152_v46 = vsel %vm2124_vm7, %v2119_v10, %v4144_v47  ;;  %v1684_v47 = vshll.u32 %v1627_v17, 16 }
 0x14c   : > { %1982 = vrot.lane.b32.xlu2 %v1947_v54, %s3192_s30 }
 0x14d   : > { %1862 = vrot.lane.b32.xlu1 %v1831_v9, %s3191_s29  ;;  %v1677_v9 = vshrl.u32 %v4234_v59, 16 }
 0x14e   : > { %1854 = vrot.lane.b32.xlu0 %v1783_v3, %s3191_s29  ;;  %v4260_v0 = vpop.permute.xlu2 %1570 }
 0x14f   : > { %v1587_v40 = vpop.permute.xlu1 %1586 }
 0x150   : > { %v1579_v7 = vpop.permute.xlu0 %1578  ;;  %v2185_v54 = vsel %vm2157_vm8, %v2152_v46, %v1587_v40  ;;  %v3159_v40 = vld [vmem:[%s3242_s22 + $0x3c] sm:$0xe]  ;;  %s4371_s22 = scalar_lea.vmem %s4507_s4, %s2846_s19 }
 0x151   : > { %v2177_v14 = vsel %vm2157_vm8, %v2144_v23, %v1579_v7  ;;  %v3157_v7 = vor.u32 %v3156_v45, %v4248_v53  ;;  %v3160_v58 = vor.u32 %v3159_v40, %v4237_v48 }
 0x152   : > { %v2210_v2 = vsel %vm2190_vm9, %v2177_v14, %v4169_v34  ;;  %v1631_v34 = vpack.c.b16 %v1615_v60, %v1615_v60 }
 0x153   : > { %v1933_v41 = vrot.slane %v3157_v7, 1  ;;  %v1921_v29 = vrot.slane %v3160_v58, 1 }
 0x154   : > { %1334 = vrot.lane.b32.xlu2 %v1223_v26, %s3188_s26  ;;  %v1732_v35 = vshll.u32 %v1631_v34, 16  ;;  %v1682_v26 = vor.u32 %v1681_v55, %v1677_v9  ;;  %v1934_v24 = vrot.slane %v1631_v34, 1 }
 0x155   : > { %1326 = vrot.lane.b32.xlu1 %v1175_v43, %s3188_s26  ;;  %v1923_v53 = vsel %vm887_vm1, %v1921_v29, %v1922_v61 }
 0x156   : > { %1990 = vrot.lane.b32.xlu0 %v1959_v63, %s3192_s30  ;;  %v1963_v20 = vpop.permute.xlu2 %1962  ;;  %v1734_v25 = vrot.slane %v1732_v35, 1  ;;  %v1935_v14 = vsel %vm887_vm1, %v1933_v41, %v1934_v24  ;;  %v4361_v24 = vld [vmem:[%s4506_s3] ss:$0 sm:$0xff] }
 0x157   : > { %v1979_v31 = vpop.permute.xlu1 %1978 }
 0x158   : > { %v2243_v16 = vsel %vm2223_vm10, %v2210_v2, %v1979_v31  ;;  %v1859_v51 = vpop.permute.xlu0 %1858 }
 0x159   : > { %2837 = vmatmul.msk.bf16.gmra.mxu2 %vm2276_vm11, %v2243_v16  ;;  %v2218_v52 = vsel %vm2190_vm9, %v2185_v54, %v1859_v51 }
 0x15a   : > { %v2251_v3 = vsel %vm2223_vm10, %v2218_v52, %v4194_v37  ;;  %v1686_v37 = vrot.slane %v1684_v47, 1 }
 0x15b   : > { %2841 = vmatmul.msk.bf16.gmra.mxu3 %vm2276_vm11, %v2251_v3 }
 0x15c   : > { %1566 = vrot.lane.b32.xlu2 %v4234_v59, %s3189_s27  ;;  %v1735_v59 = vsel %vm614_vm0, %v1730_v18, %v1734_v25  ;;  %v1687_v27 = vsel %vm614_vm0, %v1682_v26, %v1686_v37 }
 0x15d   : > { %1462 = vrot.lane.b32.xlu1 %v1423_v15, %s3190_s28 }
 0x15e   : > { %1454 = vrot.lane.b32.xlu0 %v1411_v12, %s3190_s28  ;;  %v1349_v21 = vpop.permute.xlu2 %1348 }
 0x15f   : > { %v1331_v4 = vpop.permute.xlu1 %1330  ;;  %v2121_v51 = vsel %vm2091_vm6, %v4036_v44, %v1349_v21 }
 0x160   : > { %v1323_v30 = vpop.permute.xlu0 %1322  ;;  %v2103_v17 = vsel %vm2091_vm6, %v3949_v32, %v1331_v4 }
 0x161   : > { %v2095_v63 = vsel %vm2091_vm6, %v3929_v8, %v1323_v30 }
 0x164   : > { %1846 = vrot.lane.b32.xlu2 %v1735_v59, %s3191_s29 }
 0x165   : > { %1838 = vrot.lane.b32.xlu1 %v1687_v27, %s3191_s29 }
 0x166   : > { %1574 = vrot.lane.b32.xlu0 %v4245_v39, %s3189_s27  ;;  %v1581_v57 = vpop.permute.xlu2 %1580  ;;  %v2128_v39 = vsel %vm2124_vm7, %v2095_v63, %v4226_v5 }
 0x167   : > { %v1563_v43 = vpop.permute.xlu1 %1562 }
 0x168   : > { %v1459_v23 = vpop.permute.xlu0 %1458  ;;  %v2161_v36 = vsel %vm2157_vm8, %v2128_v39, %v1563_v43 }
 0x169   : > { %v2136_v8 = vsel %vm2124_vm7, %v2103_v17, %v1459_v23 }
 0x16a   : > { %v2169_v31 = vsel %vm2157_vm8, %v2136_v8, %v4260_v0 }
 0x16d   : > { %1974 = vrot.lane.b32.xlu1 %v1935_v14, %s3192_s30 }
 0x16e   : > { %1966 = vrot.lane.b32.xlu0 %v1923_v53, %s3192_s30  ;;  %v1861_v19 = vpop.permute.xlu2 %1860 }
 0x16f   : > { %v1843_v48 = vpop.permute.xlu1 %1842 }
 0x170   : > { %v1835_v10 = vpop.permute.xlu0 %1834  ;;  %v2202_v5 = vsel %vm2190_vm9, %v2169_v31, %v1843_v48 }
 0x171   : > { %v2194_v13 = vsel %vm2190_vm9, %v2161_v36, %v1835_v10 }
 0x172   : > { %v2227_v60 = vsel %vm2223_vm10, %v2194_v13, %v1963_v20 }
 0x173   : > { %2829 = vmatmul.msk.bf16.gmra.mxu0 %vm2276_vm11, %v2227_v60 }
 0x176   : > { %v1325_v6 = vpop.permute.xlu2 %1324 }
 0x177   : > { %v1341_v22 = vpop.permute.xlu1 %1340  ;;  %v2097_v18 = vsel %vm2091_vm6, %v3920_v56, %v1325_v6  ;;  %v4354_v56 = vld [vmem:[%s4505_s2] ss:$0 sm:$0xff] }
 0x178   : > { %v1971_v2 = vpop.permute.xlu0 %1970  ;;  %v2113_v0 = vsel %vm2091_vm6, %v4008_v49, %v1341_v22 }
 0x179   : > { %v2235_v46 = vsel %vm2223_vm10, %v2202_v5, %v1971_v2 }
 0x17a   : > { %2833 = vmatmul.msk.bf16.gmra.mxu1 %vm2276_vm11, %v2235_v46 }
 0x17e   : > { %v1461_v9 = vpop.permute.xlu2 %1460 }
 0x17f   : > { %v1477_v16 = vpop.permute.xlu1 %1476 }
 0x180   : > { %v1469_v38 = vpop.permute.xlu0 %1468  ;;  %v2154_v15 = vsel %vm2124_vm7, %v2121_v51, %v1477_v16 }
 0x181   : > { %v2146_v52 = vsel %vm2124_vm7, %v2113_v0, %v1469_v38 }
 0x182   : > { %v2179_v3 = vsel %vm2157_vm8, %v2146_v52, %v1581_v57 }
 0x186   : > { %v1837_v35 = vpop.permute.xlu2 %1836 }
 0x187   : > { %v1853_v32 = vpop.permute.xlu1 %1852 }
 0x188   : > { %v1589_v54 = vpop.permute.xlu0 %1588  ;;  %v2212_v28 = vsel %vm2190_vm9, %v2179_v3, %v1853_v32 }
 0x189   : > { %v2187_v34 = vsel %vm2157_vm8, %v2154_v15, %v1589_v54 }
 0x18a   : > { %v2220_v47 = vsel %vm2190_vm9, %v2187_v34, %v1861_v19 }
 0x18e   : > { %v1973_v25 = vpop.permute.xlu2 %1972 }
 0x18f   : > { %v1989_v55 = vpop.permute.xlu1 %1988 }
 0x190   : > { %v2253_v45 = vsel %vm2223_vm10, %v2220_v47, %v1989_v55  ;;  %v1981_v44 = vpop.permute.xlu0 %1980 }
 0x191   : > { %2842 = vmatmul.msk.bf16.gmra.mxu3 %vm2276_vm11, %v2253_v45  ;;  %v2245_v1 = vsel %vm2223_vm10, %v2212_v28, %v1981_v44 }
 0x192   : > { %2838 = vmatmul.msk.bf16.gmra.mxu2 %vm2276_vm11, %v2245_v1 }
 0x196   : > { %v1471_v43 = vpop.permute.xlu2 %1470 }
 0x197   : > { %v1453_v49 = vpop.permute.xlu1 %1452 }
 0x198   : > { %v1333_v20 = vpop.permute.xlu0 %1332  ;;  %v2130_v26 = vsel %vm2124_vm7, %v2097_v18, %v1453_v49 }
 0x199   : > { %v2105_v4 = vsel %vm2091_vm6, %v3854_v62, %v1333_v20 }
 0x19a   : > { %v2138_v27 = vsel %vm2124_vm7, %v2105_v4, %v1461_v9 }
 0x19e   : > { %v1591_v60 = vpop.permute.xlu2 %1590 }
 0x19f   : > { %v1573_v12 = vpop.permute.xlu1 %1572 }
 0x1a0   : > { %v1565_v40 = vpop.permute.xlu0 %1564  ;;  %v2171_v58 = vsel %vm2157_vm8, %v2138_v27, %v1573_v12 }
 0x1a1   : > { %v2163_v37 = vsel %vm2157_vm8, %v2130_v26, %v1565_v40 }
 0x1a2   : > { %v2196_v30 = vsel %vm2190_vm9, %v2163_v37, %v1837_v35 }
 0x1a6   : > { %v1983_v54 = vpop.permute.xlu2 %1982 }
 0x1a7   : > { %v1965_v59 = vpop.permute.xlu1 %1964 }
 0x1a8   : > { %v2229_v7 = vsel %vm2223_vm10, %v2196_v30, %v1965_v59  ;;  %v1845_v21 = vpop.permute.xlu0 %1844 }
 0x1a9   : > { %2830 = vmatmul.msk.bf16.gmra.mxu0 %vm2276_vm11, %v2229_v7  ;;  %v2204_v41 = vsel %vm2190_vm9, %v2171_v58, %v1845_v21 }
 0x1aa   : > { %v2237_v62 = vsel %vm2223_vm10, %v2204_v41, %v1973_v25 }
 0x1ab   : > { %2834 = vmatmul.msk.bf16.gmra.mxu1 %vm2276_vm11, %v2237_v62 }
 0x1ac   : > { %v2382_v29 = vpop.f32.mrf.mxu3 }
 0x1ad   : > { %v2430_v61 = vmul.f32 %v4354_v56, %v2382_v29  ;;  %v2362_v23 = vpop.f32.mrf.mxu2 }
 0x1ae   : > { %v2422_v14 = vmul.f32 %v4354_v56, %v2362_v23  ;;  %v1335_v26 = vpop.permute.xlu2 %1334 }
 0x1af   : > { %v2466_v53 = vadd.f32 %v4361_v24, %v2430_v61  ;;  %v1351_v63 = vpop.permute.xlu1 %1350  ;;  %v2107_v62 = vsel %vm2091_vm6, %v3982_v11, %v1335_v26 }
 0x1b0   : > { %v2458_v48 = vadd.f32 %v4361_v24, %v2422_v14  ;;  %v1343_v39 = vpop.permute.xlu0 %1342  ;;  %v2123_v45 = vsel %vm2091_vm6, %v3939_v42, %v1351_v63 }
 0x1b1   : > { %v2498_v57 = vmax.f32 %v2466_v53, 0.0  ;;  %v2115_v16 = vsel %vm2091_vm6, %v4003_v50, %v1343_v39 }
 0x1b2   : > { %v2490_v36 = vmax.f32 %v2458_v48, 0.0  ;;  %v2148_v51 = vsel %vm2124_vm7, %v2115_v16, %v1471_v43 }
 0x1b3   : > { %2530 = vst [vmem:[%s4371_s22 + $0xc0] sm:$0xff] %v2498_v57 }
 0x1b4   : > { %v2384_v10 = vpop.f32.mrf.mxu3  ;;  %2522 = vst [vmem:[%s4371_s22 + $0x80] sm:$0xff] %v2490_v36 }
 0x1b5   : > { %v2431_v13 = vmul.f32 %v4354_v56, %v2384_v10  ;;  %v2364_v17 = vpop.f32.mrf.mxu2 }
 0x1b6   : > { %v2423_v8 = vmul.f32 %v4354_v56, %v2364_v17  ;;  %v1567_v58 = vpop.permute.xlu2 %1566 }
 0x1b7   : > { %v2467_v22 = vadd.f32 %v4361_v24, %v2431_v13  ;;  %v1583_v31 = vpop.permute.xlu1 %1582 }
 0x1b8   : > { %v2459_v5 = vadd.f32 %v4361_v24, %v2423_v8  ;;  %v1479_v19 = vpop.permute.xlu0 %1478  ;;  %v2181_v0 = vsel %vm2157_vm8, %v2148_v51, %v1583_v31 }
 0x1b9   : > { %v2499_v2 = vmax.f32 %v2467_v22, 0.0  ;;  %v2156_v28 = vsel %vm2124_vm7, %v2123_v45, %v1479_v19 }
 0x1ba   : > { %v2491_v46 = vmax.f32 %v2459_v5, 0.0  ;;  %v2189_v20 = vsel %vm2157_vm8, %v2156_v28, %v1591_v60 }
 0x1bb   : > { %2531 = vst [vmem:[%s4371_s22 + $0xc8] sm:$0xff] %v2499_v2 }
 0x1bc   : > { %2523 = vst [vmem:[%s4371_s22 + $0x88] sm:$0xff] %v2491_v46 }
 0x1be   : > { %v2342_v38 = vpop.f32.mrf.mxu1  ;;  %v1847_v23 = vpop.permute.xlu2 %1846 }
 0x1bf   : > { %v2414_v6 = vmul.f32 %v4354_v56, %v2342_v38  ;;  %v1863_v32 = vpop.permute.xlu1 %1862  ;;  %v2322_v15 = vpop.f32.mrf.mxu0 }
 0x1c0   : > { %v2406_v34 = vmul.f32 %v4354_v56, %v2322_v15  ;;  %v1855_v9 = vpop.permute.xlu0 %1854  ;;  %v2222_v40 = vsel %vm2190_vm9, %v2189_v20, %v1863_v32 }
 0x1c1   : > { %v2450_v52 = vadd.f32 %v4361_v24, %v2414_v6  ;;  %v2214_v50 = vsel %vm2190_vm9, %v2181_v0, %v1855_v9 }
 0x1c2   : > { %v2442_v55 = vadd.f32 %v4361_v24, %v2406_v34  ;;  %v2247_v3 = vsel %vm2223_vm10, %v2214_v50, %v1983_v54 }
 0x1c3   : > { %v2482_v47 = vmax.f32 %v2450_v52, 0.0  ;;  %2839 = vmatmul.msk.bf16.gmra.mxu2 %vm2276_vm11, %v2247_v3 }
 0x1c4   : > { %v2474_v44 = vmax.f32 %v2442_v55, 0.0 }
 0x1c5   : > { %2514 = vst [vmem:[%s4371_s22 + $0x40] sm:$0xff] %v2482_v47 }
 0x1c6   : > { %v2344_v1 = vpop.f32.mrf.mxu1  ;;  %2506 = vst [vmem:[%s4371_s22] sm:$0xff] %v2474_v44 }
 0x1c7   : > { %v2415_v49 = vmul.f32 %v4354_v56, %v2344_v1  ;;  %v1327_v35 = vpop.permute.xlu1 %1326  ;;  %v2324_v12 = vpop.f32.mrf.mxu0 }
 0x1c8   : > { %v2407_v42 = vmul.f32 %v4354_v56, %v2324_v12  ;;  %v1991_v25 = vpop.permute.xlu0 %1990  ;;  %v2099_v29 = vsel %vm2091_vm6, %v3831_v33, %v1327_v35 }
 0x1c9   : > { %v2451_v18 = vadd.f32 %v4361_v24, %v2415_v49  ;;  %v2255_v37 = vsel %vm2223_vm10, %v2222_v40, %v1991_v25 }
 0x1ca   : > { %v2443_v4 = vadd.f32 %v4361_v24, %v2407_v42  ;;  %2843 = vmatmul.msk.bf16.gmra.mxu3 %vm2276_vm11, %v2255_v37 }
 0x1cb   : > { %v2483_v59 = vmax.f32 %v2451_v18, 0.0 }
 0x1cc   : > { %v2475_v30 = vmax.f32 %v2443_v4, 0.0 }
 0x1cd   : > { %2515 = vst [vmem:[%s4371_s22 + $0x48] sm:$0xff] %v2483_v59 }
 0x1ce   : > { %2507 = vst [vmem:[%s4371_s22 + $0x8] sm:$0xff] %v2475_v30 }
 0x1cf   : > { %v1463_v27 = vpop.permute.xlu1 %1462 }
 0x1d0   : > { %v1455_v7 = vpop.permute.xlu0 %1454  ;;  %v2140_v43 = vsel %vm2124_vm7, %v2107_v62, %v1463_v27 }
 0x1d1   : > { %v2132_v53 = vsel %vm2124_vm7, %v2099_v29, %v1455_v7 }
 0x1d2   : > { %v2165_v36 = vsel %vm2157_vm8, %v2132_v53, %v1567_v58 }
 0x1d7   : > { %v1839_v21 = vpop.permute.xlu1 %1838 }
 0x1d8   : > { %v1575_v41 = vpop.permute.xlu0 %1574  ;;  %v2198_v13 = vsel %vm2190_vm9, %v2165_v36, %v1839_v21 }
 0x1d9   : > { %v2173_v61 = vsel %vm2157_vm8, %v2140_v43, %v1575_v41 }
 0x1da   : > { %v2206_v48 = vsel %vm2190_vm9, %v2173_v61, %v1847_v23 }
 0x1dc   : > { %v2367_v14 = vpop.f32.mrf.mxu2 }
 0x1dd   : > { %v2424_v63 = vmul.f32 %v4354_v56, %v2367_v14 }
 0x1de   : > { %v2387_v39 = vpop.f32.mrf.mxu3 }
 0x1df   : > { %v2460_v57 = vadd.f32 %v4361_v24, %v2424_v63  ;;  %v1975_v11 = vpop.permute.xlu1 %1974  ;;  %v2432_v33 = vmul.f32 %v4354_v56, %v2387_v39 }
 0x1e0   : > { %v2239_v10 = vsel %vm2223_vm10, %v2206_v48, %v1975_v11  ;;  %v1967_v17 = vpop.permute.xlu0 %1966 }
 0x1e1   : > { %v2492_v60 = vmax.f32 %v2460_v57, 0.0  ;;  %2835 = vmatmul.msk.bf16.gmra.mxu1 %vm2276_vm11, %v2239_v10  ;;  %v2468_v8 = vadd.f32 %v4361_v24, %v2432_v33  ;;  %v2231_v22 = vsel %vm2223_vm10, %v2198_v13, %v1967_v17 }
 0x1e2   : > { %2831 = vmatmul.msk.bf16.gmra.mxu0 %vm2276_vm11, %v2231_v22 }
 0x1e3   : > { %2524 = vst [vmem:[%s4371_s22 + $0x90] sm:$0xff] %v2492_v60  ;;  %v2500_v31 = vmax.f32 %v2468_v8, 0.0 }
 0x1e4   : > { %v2369_v5 = vpop.f32.mrf.mxu2 }
 0x1e5   : > { %v2425_v2 = vmul.f32 %v4354_v56, %v2369_v5  ;;  %2532 = vst [vmem:[%s4371_s22 + $0xd0] sm:$0xff] %v2500_v31 }
 0x1e6   : > { %v2389_v46 = vpop.f32.mrf.mxu3 }
 0x1e7   : > { %v2461_v19 = vadd.f32 %v4361_v24, %v2425_v2  ;;  %v2433_v16 = vmul.f32 %v4354_v56, %v2389_v46 }
 0x1e9   : > { %v2493_v38 = vmax.f32 %v2461_v19, 0.0  ;;  %v2469_v6 = vadd.f32 %v4361_v24, %v2433_v16 }
 0x1eb   : > { %2525 = vst [vmem:[%s4371_s22 + $0x98] sm:$0xff] %v2493_v38  ;;  %v2501_v32 = vmax.f32 %v2469_v6, 0.0 }
 0x1ed   : > { %2533 = vst [vmem:[%s4371_s22 + $0xd8] sm:$0xff] %v2501_v32 }
 0x1f0   : > { %v2327_v54 = vpop.f32.mrf.mxu0 }
 0x1f1   : > { %v2408_v51 = vmul.f32 %v4354_v56, %v2327_v54 }
 0x1f3   : > { %v2444_v15 = vadd.f32 %v4361_v24, %v2408_v51 }
 0x1f5   : > { %v2476_v0 = vmax.f32 %v2444_v15, 0.0 }
 0x1f7   : > { %2508 = vst [vmem:[%s4371_s22 + $0x10] sm:$0xff] %v2476_v0  ;;  %v2347_v34 = vpop.f32.mrf.mxu1 }
 0x1f8   : > { %v2416_v52 = vmul.f32 %v4354_v56, %v2347_v34  ;;  %v2329_v9 = vpop.f32.mrf.mxu0 }
 0x1f9   : > { %v2409_v50 = vmul.f32 %v4354_v56, %v2329_v9 }
 0x1fa   : > { %v2452_v55 = vadd.f32 %v4361_v24, %v2416_v52 }
 0x1fb   : > { %v2445_v47 = vadd.f32 %v4361_v24, %v2409_v50 }
 0x1fc   : > { %v2484_v3 = vmax.f32 %v2452_v55, 0.0 }
 0x1fd   : > { %v2477_v45 = vmax.f32 %v2445_v47, 0.0 }
 0x1fe   : > { %2516 = vst [vmem:[%s4371_s22 + $0x50] sm:$0xff] %v2484_v3 }
 0x1ff   : > { %2509 = vst [vmem:[%s4371_s22 + $0x18] sm:$0xff] %v2477_v45  ;;  %v2349_v28 = vpop.f32.mrf.mxu1 }
 0x200   : > { %v2417_v44 = vmul.f32 %v4354_v56, %v2349_v28 }
 0x202   : > { %v2453_v1 = vadd.f32 %v4361_v24, %v2417_v44 }
 0x204   : > { %v2485_v49 = vmax.f32 %v2453_v1, 0.0 }
 0x206   : > { %2517 = vst [vmem:[%s4371_s22 + $0x58] sm:$0xff] %v2485_v49 }
 0x214   : > { %v2392_v35 = vpop.f32.mrf.mxu3 }
 0x215   : > { %v2434_v20 = vmul.f32 %v4354_v56, %v2392_v35  ;;  %v2372_v12 = vpop.f32.mrf.mxu2 }
 0x216   : > { %v2426_v40 = vmul.f32 %v4354_v56, %v2372_v12 }
 0x217   : > { %v2470_v42 = vadd.f32 %v4361_v24, %v2434_v20 }
 0x218   : > { %v2462_v18 = vadd.f32 %v4361_v24, %v2426_v40 }
 0x219   : > { %v2502_v25 = vmax.f32 %v2470_v42, 0.0 }
 0x21a   : > { %v2494_v26 = vmax.f32 %v2462_v18, 0.0 }
 0x21b   : > { %2534 = vst [vmem:[%s4371_s22 + $0xe0] sm:$0xff] %v2502_v25 }
 0x21c   : > { %v2394_v37 = vpop.f32.mrf.mxu3  ;;  %2526 = vst [vmem:[%s4371_s22 + $0xa0] sm:$0xff] %v2494_v26 }
 0x21d   : > { %v2435_v4 = vmul.f32 %v4354_v56, %v2394_v37  ;;  %v2374_v59 = vpop.f32.mrf.mxu2 }
 0x21e   : > { %v2427_v30 = vmul.f32 %v4354_v56, %v2374_v59 }
 0x21f   : > { %v2471_v27 = vadd.f32 %v4361_v24, %v2435_v4 }
 0x220   : > { %v2463_v7 = vadd.f32 %v4361_v24, %v2427_v30 }
 0x221   : > { %v2503_v58 = vmax.f32 %v2471_v27, 0.0 }
 0x222   : > { %v2495_v21 = vmax.f32 %v2463_v7, 0.0 }
 0x223   : > { %2535 = vst [vmem:[%s4371_s22 + $0xe8] sm:$0xff] %v2503_v58 }
 0x224   : > { %2527 = vst [vmem:[%s4371_s22 + $0xa8] sm:$0xff] %v2495_v21 }
 0x226   : > { %v2332_v41 = vpop.f32.mrf.mxu0 }
 0x227   : > { %v2410_v62 = vmul.f32 %v4354_v56, %v2332_v41 }
 0x228   : > { %v2352_v29 = vpop.f32.mrf.mxu1 }
 0x229   : > { %v2446_v43 = vadd.f32 %v4361_v24, %v2410_v62  ;;  %v2418_v61 = vmul.f32 %v4354_v56, %v2352_v29 }
 0x22b   : > { %v2478_v23 = vmax.f32 %v2446_v43, 0.0  ;;  %v2454_v14 = vadd.f32 %v4361_v24, %v2418_v61 }
 0x22d   : > { %2510 = vst [vmem:[%s4371_s22 + $0x20] sm:$0xff] %v2478_v23  ;;  %v2486_v53 = vmax.f32 %v2454_v14, 0.0 }
 0x22e   : > { %v2334_v63 = vpop.f32.mrf.mxu0 }
 0x22f   : > { %v2411_v48 = vmul.f32 %v4354_v56, %v2334_v63  ;;  %2518 = vst [vmem:[%s4371_s22 + $0x60] sm:$0xff] %v2486_v53 }
 0x230   : > { %v2354_v39 = vpop.f32.mrf.mxu1 }
 0x231   : > { %v2447_v57 = vadd.f32 %v4361_v24, %v2411_v48  ;;  %v2419_v11 = vmul.f32 %v4354_v56, %v2354_v39 }
 0x233   : > { %v2479_v36 = vmax.f32 %v2447_v57, 0.0  ;;  %v2455_v33 = vadd.f32 %v4361_v24, %v2419_v11 }
 0x235   : > { %2511 = vst [vmem:[%s4371_s22 + $0x28] sm:$0xff] %v2479_v36  ;;  %v2487_v10 = vmax.f32 %v2455_v33, 0.0 }
 0x237   : > { %2519 = vst [vmem:[%s4371_s22 + $0x68] sm:$0xff] %v2487_v10 }
 0x246   : > { %v2377_v13 = vpop.f32.mrf.mxu2 }
 0x247   : > { %v2428_v60 = vmul.f32 %v4354_v56, %v2377_v13 }
 0x249   : > { %v2464_v17 = vadd.f32 %v4361_v24, %v2428_v60 }
 0x24b   : > { %v2496_v8 = vmax.f32 %v2464_v17, 0.0 }
 0x24d   : > { %2528 = vst [vmem:[%s4371_s22 + $0xb0] sm:$0xff] %v2496_v8  ;;  %v2397_v22 = vpop.f32.mrf.mxu3 }
 0x24e   : > { %v2436_v31 = vmul.f32 %v4354_v56, %v2397_v22  ;;  %v2379_v5 = vpop.f32.mrf.mxu2 }
 0x24f   : > { %v2429_v2 = vmul.f32 %v4354_v56, %v2379_v5 }
 0x250   : > { %v2472_v19 = vadd.f32 %v4361_v24, %v2436_v31 }
 0x251   : > { %v2465_v46 = vadd.f32 %v4361_v24, %v2429_v2 }
 0x252   : > { %v2504_v16 = vmax.f32 %v2472_v19, 0.0 }
 0x253   : > { %v2497_v38 = vmax.f32 %v2465_v46, 0.0 }
 0x254   : > { %2536 = vst [vmem:[%s4371_s22 + $0xf0] sm:$0xff] %v2504_v16 }
 0x255   : > { %2529 = vst [vmem:[%s4371_s22 + $0xb8] sm:$0xff] %v2497_v38  ;;  %v2399_v6 = vpop.f32.mrf.mxu3 }
 0x256   : > { %v2437_v32 = vmul.f32 %v4354_v56, %v2399_v6 }
 0x258   : > { %v2473_v54 = vadd.f32 %v4361_v24, %v2437_v32 }
 0x25a   : > { %v2505_v51 = vmax.f32 %v2473_v54, 0.0 }
 0x25c   : > { %2537 = vst [vmem:[%s4371_s22 + $0xf8] sm:$0xff] %v2505_v51 }
 0x25e   : > { %v2357_v15 = vpop.f32.mrf.mxu1 }
 0x25f   : > { %v2420_v0 = vmul.f32 %v4354_v56, %v2357_v15  ;;  %v2337_v34 = vpop.f32.mrf.mxu0 }
 0x260   : > { %v2412_v52 = vmul.f32 %v4354_v56, %v2337_v34 }
 0x261   : > { %v2456_v9 = vadd.f32 %v4361_v24, %v2420_v0 }
 0x262   : > { %v2448_v50 = vadd.f32 %v4361_v24, %v2412_v52 }
 0x263   : > { %v2488_v55 = vmax.f32 %v2456_v9, 0.0 }
 0x264   : > { %v2480_v47 = vmax.f32 %v2448_v50, 0.0 }
 0x265   : > { %2520 = vst [vmem:[%s4371_s22 + $0x70] sm:$0xff] %v2488_v55 }
 0x266   : > { %v2359_v3 = vpop.f32.mrf.mxu1  ;;  %2512 = vst [vmem:[%s4371_s22 + $0x30] sm:$0xff] %v2480_v47 }
 0x267   : > { %v2421_v45 = vmul.f32 %v4354_v56, %v2359_v3  ;;  %v2339_v28 = vpop.f32.mrf.mxu0 }
 0x268   : > { %v2413_v44 = vmul.f32 %v4354_v56, %v2339_v28 }
 0x269   : > { %v2457_v1 = vadd.f32 %v4361_v24, %v2421_v45 }
 0x26a   : > { %v2449_v49 = vadd.f32 %v4361_v24, %v2413_v44 }
 0x26b   : > { %v2489_v35 = vmax.f32 %v2457_v1, 0.0 }
 0x26c   : > { %v2481_v20 = vmax.f32 %v2449_v49, 0.0 }
 0x26d   : > { %2521 = vst [vmem:[%s4371_s22 + $0x78] sm:$0xff] %v2489_v35 }
 0x26e   : > { %2513 = vst [vmem:[%s4371_s22 + $0x38] sm:$0xff] %v2481_v20 }
 0x26f PF: > { %s14_s17 = sadd.s32 1, %s3183_s17   ;;  %s4514_s15 = smov %s3179_s16 }
 0x270   : > { %p11_p5 = scmp.ge.s32.totalorder %s14_s17, 4   ;;  %s4515_s16 = smov %s4517_s18 }
 0x272   :  { %13 = sbr.rel (!%p11_p5) target bundleno = 2 (0x2), region = 78 }

</bundles_post_ra>
